<compile_context>
chip_gen: v7x
topology: tpu7x:2x2x1
jax: 0.10.0
libtpu: 0.0.40
codegen_flags: <defaults>
</compile_context>

<pallas_src>
import jax
import jax.numpy as jnp
from jax.experimental import pallas as pl
from jax.experimental.pallas import tpu as pltpu

NUM_CLASSES = 2
HID_DIM = 32                # CONFIG['hid_dim']
CLIP_FEAT_DIM = 1024
HEAD_PAD = 128              # lane-dense padding for the tiny cls_head
K_TILE = 2048               # streaming K tile over the flattened pixel axis
SINGLE_STEP_MAX = 4096      # padded K up to this -> one grid step (int8 wp <= 4 MB)

IMAGENET_MEAN = 255.0 * jnp.array([0.485, 0.456, 0.406], dtype=jnp.float32)
IMAGENET_STD = 255.0 * jnp.array([0.229, 0.224, 0.225], dtype=jnp.float32)


def _round_up(x, m):
    return (x + m - 1) // m * m


def _padded_k(flat_dim):
    """Zero-padded flattened-pixel dim: multiple of 128 (single step) or K_TILE."""
    k128 = _round_up(flat_dim, 128)
    if k128 <= SINGLE_STEP_MAX:
        return k128
    return _round_up(flat_dim, K_TILE)


# ----------------------------------------------------------------------------
# Kernels.
#   Visual stub: int8 wp (dequant via per-column scale) -> f32 accumulator.
#   cls_head:    Linear(1024,32) -> QuickGELU -> Linear(32,16) -> QuickGELU
#                -> Linear(16,8) -> QuickGELU -> Linear(8,2)
#   Head dims are zero-padded to 128 lanes; Dropout layers are identity.
# ----------------------------------------------------------------------------
def _qgelu(v):
    return v * jax.nn.sigmoid(1.702 * v)


def _cls_head(feats, w1_ref, ws_ref, bs_ref):
    # QuickGELU(0) == 0 keeps the 128-lane zero padding exact.
    h = _qgelu(jnp.dot(feats.astype(jnp.bfloat16), w1_ref[...],
                       preferred_element_type=jnp.float32) + bs_ref[0:1])
    h = _qgelu(jnp.dot(h.astype(jnp.bfloat16), ws_ref[0],
                       preferred_element_type=jnp.float32) + bs_ref[1:2])
    h = _qgelu(jnp.dot(h.astype(jnp.bfloat16), ws_ref[1],
                       preferred_element_type=jnp.float32) + bs_ref[2:3])
    return jnp.dot(h.astype(jnp.bfloat16), ws_ref[2],
                   preferred_element_type=jnp.float32) + bs_ref[3:4]


def fused_single_step_kernel(x_ref, wp_ref, sc_ref, w1_ref, ws_ref, bs_ref, o_ref):
    # Small images: entire int8 stub weight fits in VMEM -> one step, no
    # accumulator scratch, no pl.when init/finalize.
    acc = jnp.dot(x_ref[...].astype(jnp.bfloat16),
                  wp_ref[...].astype(jnp.bfloat16),
                  preferred_element_type=jnp.float32)
    feats = acc * sc_ref[0:1] + sc_ref[1:2]      # int8 dequant + folded bias
    o_ref[...] = _cls_head(feats, w1_ref, ws_ref, bs_ref)


def fused_streaming_kernel(x_ref, wp_ref, sc_ref, w1_ref, ws_ref, bs_ref,
                           o_ref, acc_ref):
    k = pl.program_id(0)

    @pl.when(k == 0)
    def _():
        acc_ref[...] = jnp.zeros_like(acc_ref)

    # Streamed int8 weight tile (double-buffered by BlockSpec), cast on-tile
    # to bf16 so the MXU runs at the bf16 rate with f32 accumulation.
    acc_ref[...] += jnp.dot(x_ref[...].astype(jnp.bfloat16),
                            wp_ref[...].astype(jnp.bfloat16),
                            preferred_element_type=jnp.float32)

    @pl.when(k == pl.num_programs(0) - 1)
    def _():
        feats = acc_ref[...] * sc_ref[0:1] + sc_ref[1:2]
        o_ref[...] = _cls_head(feats, w1_ref, ws_ref, bs_ref)


# ----------------------------------------------------------------------------
# Parameter init (deterministic, PyTorch nn.Linear-style uniform init) with
# normalization/permute folding, K padding, int8 quantization and lane-dense
# packed head constants.
# ----------------------------------------------------------------------------
def _linear_init(key, fan_in, fan_out):
    kw, kb = jax.random.split(key)
    bound = 1.0 / jnp.sqrt(jnp.float32(fan_in))
    w = jax.random.uniform(kw, (fan_in, fan_out), jnp.float32, -bound, bound)
    b = jax.random.uniform(kb, (1, fan_out), jnp.float32, -bound, bound)
    return w, b


def _pad_to(a, rows, cols):
    return jnp.pad(a, ((0, rows - a.shape[0]), (0, cols - a.shape[1])))


def init_params(key, img_h, img_w):
    kp, k1, k2, k3, k4 = jax.random.split(key, 5)
    C = 3
    flat_dim = C * img_h * img_w
    flat_pad = _padded_k(flat_dim)

    # ---- visual-backbone stand-in: Linear(3*H*W -> 1024), CHW row order ----
    wp, bp = _linear_init(kp, flat_dim, CLIP_FEAT_DIM)

    # Fold (x - mean) / std into the stand-in weights:
    #   ((x-mean)/std) @ wp + bp == x @ (wp/std) + (bp - (mean/std) @ wp)
    inv_std = jnp.repeat(1.0 / IMAGENET_STD, img_h * img_w)            # (C*H*W,)
    shift = jnp.repeat(IMAGENET_MEAN / IMAGENET_STD, img_h * img_w)    # (C*H*W,)
    bp_folded = bp - shift[None, :] @ wp                               # (1, 1024)
    wp_folded = wp * inv_std[:, None]

    # Fold permute(0,3,1,2): re-order rows CHW -> HWC so the kernel consumes
    # the NHWC-flattened raw pixels directly.
    wp_nhwc = (wp_folded.reshape(C, img_h, img_w, CLIP_FEAT_DIM)
               .transpose(1, 2, 0, 3)
               .reshape(flat_dim, CLIP_FEAT_DIM))

    # Zero-pad the K axis to the tiling multiple (exact: padded rows are zero).
    wp_nhwc = jnp.pad(wp_nhwc, ((0, flat_pad - flat_dim), (0, 0)))

    # Per-output-column symmetric int8 quantization; dequant is one per-column
    # scale applied to the f32 accumulator at finalize (algebraically exact).
    amax = jnp.maximum(jnp.max(jnp.abs(wp_nhwc), axis=0), 1e-8)
    wp_scale = (amax / 127.0).astype(jnp.float32)
    wp_q = jnp.clip(jnp.round(wp_nhwc / wp_scale[None, :]),
                    -127, 127).astype(jnp.int8)
    # Packed stub constants: row 0 = dequant scale, row 1 = folded bias.
    stub_consts = jnp.concatenate([wp_scale[None, :], bp_folded], axis=0)

    # ---- cls_head: bf16 weights, zero-padded to 128 lanes, packed ----------
    w1, b1 = _linear_init(k1, CLIP_FEAT_DIM, HID_DIM)
    w2, b2 = _linear_init(k2, HID_DIM, HID_DIM // 2)
    w3, b3 = _linear_init(k3, HID_DIM // 2, HID_DIM // 4)
    w4, b4 = _linear_init(k4, HID_DIM // 4, NUM_CLASSES)

    w1_p = _pad_to(w1, CLIP_FEAT_DIM, HEAD_PAD).astype(jnp.bfloat16)
    w_stack = jnp.stack([_pad_to(w2, HEAD_PAD, HEAD_PAD),
                         _pad_to(w3, HEAD_PAD, HEAD_PAD),
                         _pad_to(w4, HEAD_PAD, HEAD_PAD)]).astype(jnp.bfloat16)
    b_stack = jnp.concatenate([_pad_to(b1, 1, HEAD_PAD),
                               _pad_to(b2, 1, HEAD_PAD),
                               _pad_to(b3, 1, HEAD_PAD),
                               _pad_to(b4, 1, HEAD_PAD)], axis=0)  # (4,128) f32

    return dict(wp=wp_q, stub_consts=stub_consts,
                w1=w1_p, w_stack=w_stack, b_stack=b_stack)


# ----------------------------------------------------------------------------
# Forward wrapper: one fused pallas_call (single-step or K-tiled streaming).
# ----------------------------------------------------------------------------
@jax.jit
def classifier_forward(x_nhwc, params):
    B, H, W, C = x_nhwc.shape
    flat_dim = H * W * C
    flat_pad = params["wp"].shape[0]

    # Raw f32 NHWC pixels; permute + normalization folded into wp/bp, bf16
    # cast happens on-tile in the kernel (no wrapper-side HBM copy of x).
    x_flat = x_nhwc.reshape(B, flat_dim).astype(jnp.float32)
    if flat_pad != flat_dim:
        x_flat = jnp.pad(x_flat, ((0, 0), (0, flat_pad - flat_dim)))

    if flat_pad <= SINGLE_STEP_MAX:
        tk, n_k, kernel = flat_pad, 1, fused_single_step_kernel
        scratch = []
    else:
        tk, n_k, kernel = K_TILE, flat_pad // K_TILE, fused_streaming_kernel
        scratch = [pltpu.VMEM((B, CLIP_FEAT_DIM), jnp.float32)]

    const2 = lambda k: (0, 0)
    const3 = lambda k: (0, 0, 0)

    head_bytes = sum(params[n].size * params[n].dtype.itemsize
                     for n in ("stub_consts", "w1", "w_stack", "b_stack"))
    cost = pl.CostEstimate(
        flops=2 * B * flat_pad * CLIP_FEAT_DIM
        + 2 * B * (CLIP_FEAT_DIM * HEAD_PAD + 3 * HEAD_PAD * HEAD_PAD),
        transcendentals=3 * B * HEAD_PAD,
        bytes_accessed=4 * B * flat_pad             # x f32
        + flat_pad * CLIP_FEAT_DIM                  # wp int8
        + head_bytes
        + 4 * B * HEAD_PAD,                         # padded logits f32
    )

    logits_padded = pl.pallas_call(
        kernel,
        out_shape=jax.ShapeDtypeStruct((B, HEAD_PAD), jnp.float32),
        grid_spec=pltpu.PrefetchScalarGridSpec(
            num_scalar_prefetch=0,
            grid=(n_k,),
            in_specs=[
                pl.BlockSpec((B, tk), lambda k: (0, k)),               # x tile (f32)
                pl.BlockSpec((tk, CLIP_FEAT_DIM), lambda k: (k, 0)),   # int8 wp tile
                pl.BlockSpec((2, CLIP_FEAT_DIM), const2),              # scale + bias
                pl.BlockSpec((CLIP_FEAT_DIM, HEAD_PAD), const2),       # w1 (bf16)
                pl.BlockSpec((3, HEAD_PAD, HEAD_PAD), const3),         # w2/w3/w4 (bf16)
                pl.BlockSpec((4, HEAD_PAD), const2),                   # b1..b4 (f32)
            ],
            out_specs=pl.BlockSpec((B, HEAD_PAD), const2),
            scratch_shapes=scratch,
        ),
        compiler_params=pltpu.CompilerParams(
            dimension_semantics=("arbitrary",),     # K is a reduction axis
            vmem_limit_bytes=32 * 1024 * 1024,      # safe on v5e/v6e/v7x
        ),
        cost_estimate=cost,
    )(x_flat, params["wp"], params["stub_consts"],
      params["w1"], params["w_stack"], params["b_stack"])

    # Slice the lane-dense padded logits back to the real class count.
    return logits_padded[:, :NUM_CLASSES]


# ----------------------------------------------------------------------------
# Pure-JAX reference with the same folded/quantized params and the same dtype
# discipline as the kernel (validates the Pallas math).
# ----------------------------------------------------------------------------
def reference_forward(x_nhwc, params):
    B, H, W, C = x_nhwc.shape
    flat_dim = H * W * C
    flat_pad = params["wp"].shape[0]
    x = x_nhwc.reshape(B, flat_dim).astype(jnp.float32)
    x = jnp.pad(x, ((0, 0), (0, flat_pad - flat_dim)))
    acc = jnp.dot(x.astype(jnp.bfloat16), params["wp"].astype(jnp.bfloat16),
                  preferred_element_type=jnp.float32)
    feats = acc * params["stub_consts"][0:1] + params["stub_consts"][1:2]
    qg = lambda v: v * jax.nn.sigmoid(1.702 * v)
    h = qg(jnp.dot(feats.astype(jnp.bfloat16), params["w1"],
                   preferred_element_type=jnp.float32) + params["b_stack"][0:1])
    h = qg(jnp.dot(h.astype(jnp.bfloat16), params["w_stack"][0],
                   preferred_element_type=jnp.float32) + params["b_stack"][1:2])
    h = qg(jnp.dot(h.astype(jnp.bfloat16), params["w_stack"][1],
                   preferred_element_type=jnp.float32) + params["b_stack"][2:3])
    out = jnp.dot(h.astype(jnp.bfloat16), params["w_stack"][2],
                  preferred_element_type=jnp.float32) + params["b_stack"][3:4]
    return out[:, :NUM_CLASSES]


if __name__ == "__main__":
    key = jax.random.PRNGKey(0)
    k_x, k_p = jax.random.split(key)

    # NHWC input in the raw 0-255 pixel range (normalization folded into wp).
    # TODO(synk): real workloads should batch B as a multiple of 8 (ideally
    # 128+) so the streamed stub weights amortize across the batch.
    B, H, W, C = 2, 16, 16, 3
    x = jax.random.uniform(k_x, (B, H, W, C), jnp.float32, 0.0, 255.0)
    params = init_params(k_p, H, W)

    logits = classifier_forward(x, params)
    jax.block_until_ready(logits)
    assert logits.shape == (B, NUM_CLASSES)
    assert bool(jnp.all(jnp.isfinite(logits)))

    ref = reference_forward(x, params)
    assert bool(jnp.allclose(logits, ref, rtol=1e-2, atol=1e-2)), (
        "max abs diff " + str(float(jnp.max(jnp.abs(logits - ref)))))
    print("KERNEL_OK")
</pallas_src>

<mosaic_0001>
module attributes {stable_mosaic.version = 11 : i64} {
  func.func @fused_single_step_kernel(%arg0: i32, %arg1: memref<2x768xf32, #tpu.memory_space<vmem>>, %arg2: memref<768x1024xi8, #tpu.memory_space<vmem>>, %arg3: memref<2x1024xf32, #tpu.memory_space<vmem>>, %arg4: memref<1024x128xbf16, #tpu.memory_space<vmem>>, %arg5: memref<3x128x128xbf16, #tpu.memory_space<vmem>>, %arg6: memref<4x128xf32, #tpu.memory_space<vmem>>, %arg7: memref<2x128xf32, #tpu.memory_space<vmem>>) attributes {dimension_semantics = [#tpu.dimension_semantics<arbitrary>], iteration_bounds = array<i64: 1>, scalar_prefetch = 0 : i64, scratch_operands = 0 : i64, tpu.core_type = #tpu.core_type<tc>, window_params = [{transform_indices = @transform_0, window_bounds = array<i64: 2, 768>}, {transform_indices = @transform_1, window_bounds = array<i64: 768, 1024>}, {pipeline_mode = #tpu.pipeline_mode<synchronous>, transform_indices = @transform_2, window_bounds = array<i64: 2, 1024>}, {pipeline_mode = #tpu.pipeline_mode<synchronous>, transform_indices = @transform_3, window_bounds = array<i64: 1024, 128>}, {pipeline_mode = #tpu.pipeline_mode<synchronous>, transform_indices = @transform_4, window_bounds = array<i64: 3, 128, 128>}, {pipeline_mode = #tpu.pipeline_mode<synchronous>, transform_indices = @transform_5, window_bounds = array<i64: 4, 128>}, {pipeline_mode = #tpu.pipeline_mode<synchronous>, transform_indices = @transform_6, window_bounds = array<i64: 2, 128>}]} {
    %c0 = arith.constant 0 : index
    %c0_0 = arith.constant 0 : index
    %0 = vector.load %arg1[%c0, %c0_0] : memref<2x768xf32, #tpu.memory_space<vmem>>, vector<2x768xf32>
    %1 = arith.truncf %0 : vector<2x768xf32> to vector<2x768xbf16>
    %c0_1 = arith.constant 0 : index
    %c0_2 = arith.constant 0 : index
    %2 = vector.load %arg2[%c0_1, %c0_2] : memref<768x1024xi8, #tpu.memory_space<vmem>>, vector<768x1024xi8>
    %3 = arith.sitofp %2 : vector<768x1024xi8> to vector<768x1024xbf16>
    %cst = arith.constant dense<0.000000e+00> : vector<2x1024xf32>
    %4 = tpu.matmul %1, %3, %cst {dimension_numbers = #tpu.dot_dimension_numbers<[1], [0], [0], [1], [0, 0, 1, 1], [], []>} : vector<2x768xbf16>, vector<768x1024xbf16>, vector<2x1024xf32> -> vector<2x1024xf32>
    %c0_3 = arith.constant 0 : index
    %c0_4 = arith.constant 0 : index
    %5 = vector.load %arg3[%c0_3, %c0_4] : memref<2x1024xf32, #tpu.memory_space<vmem>>, vector<1x1024xf32>
    %6 = vector.broadcast %5 : vector<1x1024xf32> to vector<2x1024xf32>
    %7 = arith.mulf %4, %6 : vector<2x1024xf32>
    %c1 = arith.constant 1 : index
    %c0_5 = arith.constant 0 : index
    %8 = vector.load %arg3[%c1, %c0_5] : memref<2x1024xf32, #tpu.memory_space<vmem>>, vector<1x1024xf32>
    %9 = vector.broadcast %8 : vector<1x1024xf32> to vector<2x1024xf32>
    %10 = arith.addf %7, %9 : vector<2x1024xf32>
    %11 = arith.truncf %10 : vector<2x1024xf32> to vector<2x1024xbf16>
    %c0_6 = arith.constant 0 : index
    %c0_7 = arith.constant 0 : index
    %12 = vector.load %arg4[%c0_6, %c0_7] : memref<1024x128xbf16, #tpu.memory_space<vmem>>, vector<1024x128xbf16>
    %cst_8 = arith.constant dense<0.000000e+00> : vector<2x128xf32>
    %13 = tpu.matmul %11, %12, %cst_8 {dimension_numbers = #tpu.dot_dimension_numbers<[1], [0], [0], [1], [0, 0, 1, 1], [], []>} : vector<2x1024xbf16>, vector<1024x128xbf16>, vector<2x128xf32> -> vector<2x128xf32>
    %c0_9 = arith.constant 0 : index
    %c0_10 = arith.constant 0 : index
    %14 = vector.load %arg6[%c0_9, %c0_10] : memref<4x128xf32, #tpu.memory_space<vmem>>, vector<1x128xf32>
    %15 = vector.broadcast %14 : vector<1x128xf32> to vector<2x128xf32>
    %16 = arith.addf %13, %15 : vector<2x128xf32>
    %cst_11 = arith.constant 1.702000e+00 : f32
    %17 = vector.broadcast %cst_11 : f32 to vector<2x128xf32>
    %18 = arith.mulf %17, %16 : vector<2x128xf32>
    %19 = arith.negf %18 : vector<2x128xf32>
    %20 = math.exp %19 : vector<2x128xf32>
    %cst_12 = arith.constant 1.000000e+00 : f32
    %21 = vector.broadcast %cst_12 : f32 to vector<2x128xf32>
    %22 = arith.addf %21, %20 : vector<2x128xf32>
    %23 = arith.divf %21, %22 : vector<2x128xf32>
    %24 = arith.mulf %16, %23 : vector<2x128xf32>
    %25 = arith.truncf %24 : vector<2x128xf32> to vector<2x128xbf16>
    %c0_13 = arith.constant 0 : index
    %c0_14 = arith.constant 0 : index
    %c0_15 = arith.constant 0 : index
    %26 = vector.load %arg5[%c0_13, %c0_14, %c0_15] : memref<3x128x128xbf16, #tpu.memory_space<vmem>>, vector<1x128x128xbf16>
    %27 = vector.shape_cast %26 : vector<1x128x128xbf16> to vector<128x128xbf16>
    %cst_16 = arith.constant dense<0.000000e+00> : vector<2x128xf32>
    %28 = tpu.matmul %25, %27, %cst_16 {dimension_numbers = #tpu.dot_dimension_numbers<[1], [0], [0], [1], [0, 0, 1, 1], [], []>} : vector<2x128xbf16>, vector<128x128xbf16>, vector<2x128xf32> -> vector<2x128xf32>
    %c1_17 = arith.constant 1 : index
    %c0_18 = arith.constant 0 : index
    %29 = vector.load %arg6[%c1_17, %c0_18] : memref<4x128xf32, #tpu.memory_space<vmem>>, vector<1x128xf32>
    %30 = vector.broadcast %29 : vector<1x128xf32> to vector<2x128xf32>
    %31 = arith.addf %28, %30 : vector<2x128xf32>
    %cst_19 = arith.constant 1.702000e+00 : f32
    %32 = vector.broadcast %cst_19 : f32 to vector<2x128xf32>
    %33 = arith.mulf %32, %31 : vector<2x128xf32>
    %34 = arith.negf %33 : vector<2x128xf32>
    %35 = math.exp %34 : vector<2x128xf32>
    %cst_20 = arith.constant 1.000000e+00 : f32
    %36 = vector.broadcast %cst_20 : f32 to vector<2x128xf32>
    %37 = arith.addf %36, %35 : vector<2x128xf32>
    %38 = arith.divf %36, %37 : vector<2x128xf32>
    %39 = arith.mulf %31, %38 : vector<2x128xf32>
    %40 = arith.truncf %39 : vector<2x128xf32> to vector<2x128xbf16>
    %c1_21 = arith.constant 1 : index
    %c0_22 = arith.constant 0 : index
    %c0_23 = arith.constant 0 : index
    %41 = vector.load %arg5[%c1_21, %c0_22, %c0_23] : memref<3x128x128xbf16, #tpu.memory_space<vmem>>, vector<1x128x128xbf16>
    %42 = vector.shape_cast %41 : vector<1x128x128xbf16> to vector<128x128xbf16>
    %cst_24 = arith.constant dense<0.000000e+00> : vector<2x128xf32>
    %43 = tpu.matmul %40, %42, %cst_24 {dimension_numbers = #tpu.dot_dimension_numbers<[1], [0], [0], [1], [0, 0, 1, 1], [], []>} : vector<2x128xbf16>, vector<128x128xbf16>, vector<2x128xf32> -> vector<2x128xf32>
    %c2 = arith.constant 2 : index
    %c0_25 = arith.constant 0 : index
    %44 = vector.load %arg6[%c2, %c0_25] : memref<4x128xf32, #tpu.memory_space<vmem>>, vector<1x128xf32>
    %45 = vector.broadcast %44 : vector<1x128xf32> to vector<2x128xf32>
    %46 = arith.addf %43, %45 : vector<2x128xf32>
    %cst_26 = arith.constant 1.702000e+00 : f32
    %47 = vector.broadcast %cst_26 : f32 to vector<2x128xf32>
    %48 = arith.mulf %47, %46 : vector<2x128xf32>
    %49 = arith.negf %48 : vector<2x128xf32>
    %50 = math.exp %49 : vector<2x128xf32>
    %cst_27 = arith.constant 1.000000e+00 : f32
    %51 = vector.broadcast %cst_27 : f32 to vector<2x128xf32>
    %52 = arith.addf %51, %50 : vector<2x128xf32>
    %53 = arith.divf %51, %52 : vector<2x128xf32>
    %54 = arith.mulf %46, %53 : vector<2x128xf32>
    %55 = arith.truncf %54 : vector<2x128xf32> to vector<2x128xbf16>
    %c2_28 = arith.constant 2 : index
    %c0_29 = arith.constant 0 : index
    %c0_30 = arith.constant 0 : index
    %56 = vector.load %arg5[%c2_28, %c0_29, %c0_30] : memref<3x128x128xbf16, #tpu.memory_space<vmem>>, vector<1x128x128xbf16>
    %57 = vector.shape_cast %56 : vector<1x128x128xbf16> to vector<128x128xbf16>
    %cst_31 = arith.constant dense<0.000000e+00> : vector<2x128xf32>
    %58 = tpu.matmul %55, %57, %cst_31 {dimension_numbers = #tpu.dot_dimension_numbers<[1], [0], [0], [1], [0, 0, 1, 1], [], []>} : vector<2x128xbf16>, vector<128x128xbf16>, vector<2x128xf32> -> vector<2x128xf32>
    %c3 = arith.constant 3 : index
    %c0_32 = arith.constant 0 : index
    %59 = vector.load %arg6[%c3, %c0_32] : memref<4x128xf32, #tpu.memory_space<vmem>>, vector<1x128xf32>
    %60 = vector.broadcast %59 : vector<1x128xf32> to vector<2x128xf32>
    %61 = arith.addf %58, %60 : vector<2x128xf32>
    %c0_33 = arith.constant 0 : index
    %c0_34 = arith.constant 0 : index
    %62 = vector.load %arg7[%c0_33, %c0_34] : memref<2x128xf32, #tpu.memory_space<vmem>>, vector<2x128xf32>
    tpu.vector_store %arg7[%c0_33, %c0_34], %61 {strides = array<i32>} : memref<2x128xf32, #tpu.memory_space<vmem>>, vector<2x128xf32>,
    return
  }
  func.func @transform_0(%arg0: i32) -> (i32, i32) {
    %c0_i32 = arith.constant 0 : i32
    %c0_i32_0 = arith.constant 0 : i32
    return %c0_i32, %arg0 : i32, i32
  }
  func.func @transform_1(%arg0: i32) -> (i32, i32) {
    %c0_i32 = arith.constant 0 : i32
    %c0_i32_0 = arith.constant 0 : i32
    return %arg0, %c0_i32 : i32, i32
  }
  func.func @transform_2(%arg0: i32) -> (i32, i32) {
    %c0_i32 = arith.constant 0 : i32
    %c0_i32_0 = arith.constant 0 : i32
    %c0_i32_1 = arith.constant 0 : i32
    return %c0_i32, %c0_i32_0 : i32, i32
  }
  func.func @transform_3(%arg0: i32) -> (i32, i32) {
    %c0_i32 = arith.constant 0 : i32
    %c0_i32_0 = arith.constant 0 : i32
    %c0_i32_1 = arith.constant 0 : i32
    return %c0_i32, %c0_i32_0 : i32, i32
  }
  func.func @transform_4(%arg0: i32) -> (i32, i32, i32) {
    %c0_i32 = arith.constant 0 : i32
    %c0_i32_0 = arith.constant 0 : i32
    %c0_i32_1 = arith.constant 0 : i32
    %c0_i32_2 = arith.constant 0 : i32
    return %c0_i32, %c0_i32_0, %c0_i32_1 : i32, i32, i32
  }
  func.func @transform_5(%arg0: i32) -> (i32, i32) {
    %c0_i32 = arith.constant 0 : i32
    %c0_i32_0 = arith.constant 0 : i32
    %c0_i32_1 = arith.constant 0 : i32
    return %c0_i32, %c0_i32_0 : i32, i32
  }
  func.func @transform_6(%arg0: i32) -> (i32, i32) {
    %c0_i32 = arith.constant 0 : i32
    %c0_i32_0 = arith.constant 0 : i32
    %c0_i32_1 = arith.constant 0 : i32
    return %c0_i32, %c0_i32_0 : i32, i32
  }
}

</mosaic_0001>

<bundles_post_ra>
// kernel: classifier_forward.1
= control target key start
LH: loop header
LB: loop body
LE: loop exit
PB: predicated region body
PF: predicated region fallthrough
CT: control target
= control target key end

     0   :  { %11 = vsyncpa [#allocation3], 0  ;;  %s3276_s0 = inlined_call_operand.vmem [shape: f32[2,768], index: 0, kind: input, shape index: {}]   ;;  %s3277_s1 = inlined_call_operand.hbm [shape: s8[768,1024], index: 1, kind: input, shape index: {}]   ;;  %s3278_s2 = inlined_call_operand.vmem [shape: f32[2,1024], index: 2, kind: input, shape index: {}]   ;;  %s3279_s3 = inlined_call_operand.vmem [shape: bf16[1024,128], index: 3, kind: input, shape index: {}]   ;;  %s3280_s4 = inlined_call_operand.vmem [shape: bf16[3,128,128], index: 4, kind: input, shape index: {}]   ;;  %s3281_s5 = inlined_call_operand.vmem [shape: f32[4,128], index: 5, kind: input, shape index: {}]   ;;  %s3282_s6 = inlined_call_operand.hbm [shape: f32[2,128], index: 6, kind: output, shape index: {}]  }
   0x1   :  { %12 = vsyncpa [#allocation4], 0  ;;  %s2798_s21 = smov [#allocation2]   ;;  %s2750_s25 = scalar_lea.hbm %s3277_s1, 24576 }
   0x2   :  { %s20_s22 = sshll.u32 %s2798_s21, 4  ;;  %p2751_p0 = scmp.ne.s32.totalorder %s3277_s1, %s2750_s25  ;;  %s21_s22 = int_to_ptr.vmem [resolvable:$true] %s20_s22 }
   0x3   :  { %p2754_p1 = scmp.lt.u32.totalorder %s2750_s25, %s3277_s1 }
   0x5   :  { %p2756_p2 = pnand %p2754_p1, %p2751_p0 }
   0x7   :  { %2759 = shalt.err (!%p2756_p2)
}
   0x8   :  { %s2760_s30 = scalar_lea.vmem %s21_s22, 24576  ;;  %p2765_p4 = scmp.lt.s32.totalorder %s21_s22, %s21_s22 }
   0x9   :  { %p2761_p3 = scmp.ne.s32.totalorder %s21_s22, %s2760_s30  ;;  %p2766_p5 = scmp.lt.s32.totalorder %s2760_s30, %s2760_s30 }
   0xb   :  { %p2767_p6 = por %p2766_p5, %p2765_p4 }
   0xd   :  { %p2768_p7 = pnand %p2767_p6, %p2761_p3 }
   0xf   :  { %2771 = shalt.err (!%p2768_p7)
}
  0x10   :  { %s2799_s7 = smov 1024   ;;  %s2800_s8 = smov 64  }
  0x11   :  { %26 = dma.hbm_to_vmem [thread:$0]  %s3277_s1, 24576, %s21_s22, [#allocation3], %s2799_s7, %s2799_s7, %s2800_s8  }
  0x12   :  { %2794 = dma.done.wait [#allocation3], 24576  }
  0x13   :  { %2795 = vsyncadd [#allocation3], 4294942720  ;;  %v81_v0 = vld [vmem:[#allocation2 + $0x8] sm:$0xff]  ;;  %v83_v1 = vld [vmem:[#allocation2 + $0x18] sm:$0xff]  ;;  %v2801_v18 = vmov 1983009808   ;;  %v47_v20 = vlaneseq }
  0x14   :  { %v80_v2 = vld [vmem:[#allocation2] sm:$0xff]  ;;  %v273_v3 = vunpack.c.l.s8.bf16 %v81_v0  ;;  %v281_v4 = vunpack.c.h.s8.bf16 %v81_v0  ;;  %v275_v5 = vunpack.c.l.s8.bf16 %v83_v1  ;;  %v283_v6 = vunpack.c.h.s8.bf16 %v83_v1  ;;  %v82_v7 = vld [vmem:[#allocation2 + $0x10] sm:$0xff]  ;;  %v89_v10 = vld [vmem:[#allocation2 + $0x48] sm:$0xff]  ;;  %s2804_s12 = smov [#allocation5]  }
  0x15   :  { %v272_v8 = vunpack.c.l.s8.bf16 %v80_v2  ;;  %v274_v9 = vunpack.c.l.s8.bf16 %v82_v7  ;;  %v91_v11 = vld [vmem:[#allocation2 + $0x58] sm:$0xff]  ;;  %v280_v12 = vunpack.c.h.s8.bf16 %v80_v2  ;;  %v282_v13 = vunpack.c.h.s8.bf16 %v82_v7  ;;  %v88_v16 = vld [vmem:[#allocation2 + $0x40] sm:$0xff]  ;;  %v90_v17 = vld [vmem:[#allocation2 + $0x50] sm:$0xff] }
  0x16   :  { %656 = vmatprep.subr.bf16.mxu0 %v273_v3  ;;  %779 = vmatprep.subr.bf16.mxu1 %v275_v5  ;;  %v289_v14 = vunpack.c.l.s8.bf16 %v89_v10  ;;  %v291_v15 = vunpack.c.l.s8.bf16 %v91_v11  ;;  %v45_v19 = vunpack.c.l.s4 %v2801_v18  ;;  %v288_v21 = vunpack.c.l.s8.bf16 %v88_v16  ;;  %v97_v27 = vld [vmem:[#allocation2 + $0x88] sm:$0xff]  ;;  %v99_v28 = vld [vmem:[#allocation2 + $0x98] sm:$0xff]  ;;  %v96_v33 = vld [vmem:[#allocation2 + $0x80] sm:$0xff] }
  0x17   :  { %657 = vmatpush1.bf16.msra.mxu0 %v272_v8  ;;  %780 = vmatpush1.bf16.msra.mxu1 %v274_v9  ;;  %v290_v22 = vunpack.c.l.s8.bf16 %v90_v17  ;;  %v297_v23 = vunpack.c.h.s8.bf16 %v89_v10  ;;  %v299_v24 = vunpack.c.h.s8.bf16 %v91_v11  ;;  %v2852_v26 = vshrl.u32 %v47_v20, 7  ;;  %v98_v34 = vld [vmem:[#allocation2 + $0x90] sm:$0xff]  ;;  %v2860_v36 = vld [vmem:[%s3276_s0] sm:$0xff]  ;;  %v105_v42 = vld [vmem:[#allocation2 + $0xc8] sm:$0xff] }
  0x18   :  { %658 = vmatprep.subr.bf16.mxu0 %v281_v4  ;;  %781 = vmatprep.subr.bf16.mxu1 %v283_v6  ;;  %v46_v25 = vunpack.c.0.s8 %v45_v19  ;;  %v296_v29 = vunpack.c.h.s8.bf16 %v88_v16  ;;  %v298_v30 = vunpack.c.h.s8.bf16 %v90_v17  ;;  %v305_v31 = vunpack.c.l.s8.bf16 %v97_v27  ;;  %v107_v43 = vld [vmem:[#allocation2 + $0xd8] sm:$0xff]  ;;  %v104_v49 = vld [vmem:[#allocation2 + $0xc0] sm:$0xff]  ;;  %v106_v50 = vld [vmem:[#allocation2 + $0xd0] sm:$0xff] }
  0x19   :  { %v307_v32 = vunpack.c.l.s8.bf16 %v99_v28  ;;  %v304_v37 = vunpack.c.l.s8.bf16 %v96_v33  ;;  %v306_v38 = vunpack.c.l.s8.bf16 %v98_v34  ;;  %v313_v39 = vunpack.c.h.s8.bf16 %v97_v27  ;;  %v113_v56 = vld [vmem:[#allocation2 + $0x108] sm:$0xff]  ;;  %v115_v57 = vld [vmem:[#allocation2 + $0x118] sm:$0xff]  ;;  %v112_v58 = vld [vmem:[#allocation2 + $0x100] sm:$0xff] }
  0x1a   :  { %v2855_v35 = vsub.s32 %v46_v25, %v2852_v26  ;;  %v315_v40 = vunpack.c.h.s8.bf16 %v99_v28  ;;  %v312_v45 = vunpack.c.h.s8.bf16 %v96_v33  ;;  %v314_v46 = vunpack.c.h.s8.bf16 %v98_v34  ;;  %v114_v59 = vld [vmem:[#allocation2 + $0x110] sm:$0xff]  ;;  %v121_v4 = vld [vmem:[#allocation2 + $0x148] sm:$0xff]  ;;  %v123_v5 = vld [vmem:[#allocation2 + $0x158] sm:$0xff] }
  0x1b   :  { %659 = vmatpush1.bf16.msra.mxu0 %v280_v12  ;;  %782 = vmatpush1.bf16.msra.mxu1 %v282_v13  ;;  %v321_v47 = vunpack.c.l.s8.bf16 %v105_v42  ;;  %v323_v48 = vunpack.c.l.s8.bf16 %v107_v43  ;;  %v320_v52 = vunpack.c.l.s8.bf16 %v104_v49  ;;  %v322_v53 = vunpack.c.l.s8.bf16 %v106_v50  ;;  %v120_v6 = vld [vmem:[#allocation2 + $0x140] sm:$0xff]  ;;  %v122_v7 = vld [vmem:[#allocation2 + $0x150] sm:$0xff]  ;;  %v129_v16 = vld [vmem:[#allocation2 + $0x188] sm:$0xff] }
  0x1c   :  { %660 = vmatprep.subr.bf16.mxu0 %v289_v14  ;;  %783 = vmatprep.subr.bf16.mxu1 %v291_v15  ;;  %v2864_v41 = vrot.slane %v2860_v36, %v2855_v35  ;;  %v329_v54 = vunpack.c.h.s8.bf16 %v105_v42  ;;  %v331_v55 = vunpack.c.h.s8.bf16 %v107_v43  ;;  %v328_v60 = vunpack.c.h.s8.bf16 %v104_v49  ;;  %v131_v17 = vld [vmem:[#allocation2 + $0x198] sm:$0xff]  ;;  %v128_v18 = vld [vmem:[#allocation2 + $0x180] sm:$0xff]  ;;  %v130_v19 = vld [vmem:[#allocation2 + $0x190] sm:$0xff] }
  0x1d   :  { %v330_v61 = vunpack.c.h.s8.bf16 %v106_v50  ;;  %v337_v62 = vunpack.c.l.s8.bf16 %v113_v56  ;;  %v339_v63 = vunpack.c.l.s8.bf16 %v115_v57  ;;  %v336_v0 = vunpack.c.l.s8.bf16 %v112_v58 }
  0x1e   :  { %v58_v44 = vcombine.high %v2864_v41, %v2864_v41  ;;  %v338_v1 = vunpack.c.l.s8.bf16 %v114_v59  ;;  %v345_v2 = vunpack.c.h.s8.bf16 %v113_v56  ;;  %v347_v3 = vunpack.c.h.s8.bf16 %v115_v57 }
  0x1f   :  { %661 = vmatpush1.bf16.msra.mxu0 %v288_v21  ;;  %784 = vmatpush1.bf16.msra.mxu1 %v290_v22  ;;  %v344_v8 = vunpack.c.h.s8.bf16 %v112_v58  ;;  %v346_v9 = vunpack.c.h.s8.bf16 %v114_v59  ;;  %v353_v10 = vunpack.c.l.s8.bf16 %v121_v4  ;;  %v355_v11 = vunpack.c.l.s8.bf16 %v123_v5  ;;  %v153_v59 = vld [vmem:[#allocation2 + $0x248] sm:$0xff] }
  0x20   :  { %662 = vmatprep.subr.bf16.mxu0 %v297_v23  ;;  %785 = vmatprep.subr.bf16.mxu1 %v299_v24  ;;  %v2868_v51 = vpack.c.bf16 %v58_v44, %v58_v44  ;;  %v352_v12 = vunpack.c.l.s8.bf16 %v120_v6  ;;  %v354_v13 = vunpack.c.l.s8.bf16 %v122_v7  ;;  %v361_v14 = vunpack.c.h.s8.bf16 %v121_v4 }
  0x21   :  { %v363_v15 = vunpack.c.h.s8.bf16 %v123_v5  ;;  %v360_v20 = vunpack.c.h.s8.bf16 %v120_v6  ;;  %v362_v21 = vunpack.c.h.s8.bf16 %v122_v7  ;;  %v369_v22 = vunpack.c.l.s8.bf16 %v129_v16  ;;  %v161_v7 = vld [vmem:[#allocation2 + $0x288] sm:$0xff] }
  0x22   :  { %688 = vmatprep.mubr.bf16.mxu0 %v2868_v51  ;;  %811 = vmatprep.mubr.bf16.mxu1 %v2868_v51  ;;  %v371_v23 = vunpack.c.l.s8.bf16 %v131_v17  ;;  %v368_v24 = vunpack.c.l.s8.bf16 %v128_v18  ;;  %v370_v25 = vunpack.c.l.s8.bf16 %v130_v19  ;;  %v377_v27 = vunpack.c.h.s8.bf16 %v129_v16 }
  0x23   :  { %663 = vmatpush1.bf16.msra.mxu0 %v296_v29  ;;  %786 = vmatpush1.bf16.msra.mxu1 %v298_v30  ;;  %v379_v28 = vunpack.c.h.s8.bf16 %v131_v17  ;;  %v137_v29 = vld [vmem:[#allocation2 + $0x1c8] sm:$0xff]  ;;  %v139_v30 = vld [vmem:[#allocation2 + $0x1d8] sm:$0xff]  ;;  %v376_v33 = vunpack.c.h.s8.bf16 %v128_v18  ;;  %v378_v34 = vunpack.c.h.s8.bf16 %v130_v19  ;;  %v425_v5 = vunpack.c.h.s8.bf16 %v153_v59 }
  0x24   :  { %664 = vmatprep.subr.bf16.mxu0 %v305_v31  ;;  %787 = vmatprep.subr.bf16.mxu1 %v307_v32  ;;  %v136_v31 = vld [vmem:[#allocation2 + $0x1c0] sm:$0xff]  ;;  %v138_v32 = vld [vmem:[#allocation2 + $0x1d0] sm:$0xff]  ;;  %v393_v43 = vunpack.c.h.s8.bf16 %v137_v29  ;;  %v395_v44 = vunpack.c.h.s8.bf16 %v139_v30  ;;  %v441_v17 = vunpack.c.h.s8.bf16 %v161_v7  ;;  %v169_v19 = vld [vmem:[#allocation2 + $0x2c8] sm:$0xff]  ;;  %vm2803_vm0 = vmmov 0  }
  0x25   :  { %v386_v42 = vunpack.c.l.s8.bf16 %v138_v32  ;;  %v394_v49 = vunpack.c.h.s8.bf16 %v138_v32  ;;  %v177_v32 = vld [vmem:[#allocation2 + $0x308] sm:$0xff] }
  0x27   :  { %665 = vmatpush1.bf16.msra.mxu0 %v304_v37  ;;  %788 = vmatpush1.bf16.msra.mxu1 %v306_v38  ;;  %v385_v37 = vunpack.c.l.s8.bf16 %v137_v29  ;;  %v387_v38 = vunpack.c.l.s8.bf16 %v139_v30  ;;  %v457_v30 = vunpack.c.h.s8.bf16 %v169_v19 }
  0x28   :  { %666 = vmatprep.subr.bf16.mxu0 %v313_v39  ;;  %789 = vmatprep.subr.bf16.mxu1 %v315_v40  ;;  %v43_v39 = vcombine.high %v2860_v36, %v2860_v36  ;;  %v384_v40 = vunpack.c.l.s8.bf16 %v136_v31 }
  0x2b   :  { %667 = vmatpush1.bf16.msra.mxu0 %v312_v45  ;;  %790 = vmatpush1.bf16.msra.mxu1 %v314_v46  ;;  %v145_v45 = vld [vmem:[#allocation2 + $0x208] sm:$0xff]  ;;  %v147_v46 = vld [vmem:[#allocation2 + $0x218] sm:$0xff] }
  0x2c   :  { %668 = vmatprep.subr.bf16.mxu0 %v321_v47  ;;  %791 = vmatprep.subr.bf16.mxu1 %v323_v48  ;;  %v2875_v47 = vrot.slane %v43_v39, %v2855_v35  ;;  %v392_v48 = vunpack.c.h.s8.bf16 %v136_v31  ;;  %v401_v36 = vunpack.c.l.s8.bf16 %v145_v45  ;;  %v403_v50 = vunpack.c.l.s8.bf16 %v147_v46 }
  0x2d   :  { %v409_v57 = vunpack.c.h.s8.bf16 %v145_v45  ;;  %v411_v58 = vunpack.c.h.s8.bf16 %v147_v46  ;;  %v473_v45 = vunpack.c.h.s8.bf16 %v177_v32 }
  0x2f   :  { %669 = vmatpush1.bf16.msra.mxu0 %v320_v52  ;;  %792 = vmatpush1.bf16.msra.mxu1 %v322_v53  ;;  %v144_v52 = vld [vmem:[#allocation2 + $0x200] sm:$0xff]  ;;  %v146_v53 = vld [vmem:[#allocation2 + $0x210] sm:$0xff] }
  0x30   :  { %670 = vmatprep.subr.bf16.mxu0 %v329_v54  ;;  %793 = vmatprep.subr.bf16.mxu1 %v331_v55  ;;  %v59_v54 = vcombine.high %v2875_v47, %v2875_v47  ;;  %v2881_v55 = vpack.c.bf16 %v2864_v41, %v2864_v41  ;;  %v400_v35 = vunpack.c.l.s8.bf16 %v144_v52  ;;  %v402_v56 = vunpack.c.l.s8.bf16 %v146_v53 }
  0x31   :  { %v408_v41 = vunpack.c.h.s8.bf16 %v144_v52 }
  0x33   :  { %671 = vmatpush1.bf16.msra.mxu0 %v328_v60  ;;  %794 = vmatpush1.bf16.msra.mxu1 %v330_v61  ;;  %v155_v60 = vld [vmem:[#allocation2 + $0x258] sm:$0xff]  ;;  %v2883_v61 = vpack.c.bf16 %v59_v54, %v59_v54  ;;  %v184_v54 = vld [vmem:[#allocation2 + $0x340] sm:$0xff] }
  0x34   :  { %672 = vmatprep.subr.bf16.mxu0 %v337_v62  ;;  %795 = vmatprep.subr.bf16.mxu1 %v339_v63  ;;  %v152_v62 = vld [vmem:[#allocation2 + $0x240] sm:$0xff]  ;;  %v154_v63 = vld [vmem:[#allocation2 + $0x250] sm:$0xff]  ;;  %v427_v6 = vunpack.c.h.s8.bf16 %v155_v60 }
  0x35   :  { %v418_v4 = vunpack.c.l.s8.bf16 %v154_v63 }
  0x37   :  { %673 = vmatpush1.bf16.msra.mxu0 %v336_v0  ;;  %796 = vmatpush1.bf16.msra.mxu1 %v338_v1  ;;  %v410_v0 = vunpack.c.h.s8.bf16 %v146_v53  ;;  %v417_v1 = vunpack.c.l.s8.bf16 %v153_v59 }
  0x38   :  { %674 = vmatprep.subr.bf16.mxu0 %v345_v2  ;;  %797 = vmatprep.subr.bf16.mxu1 %v347_v3  ;;  %v419_v2 = vunpack.c.l.s8.bf16 %v155_v60  ;;  %v416_v3 = vunpack.c.l.s8.bf16 %v152_v62  ;;  %v193_v60 = vld [vmem:[#allocation2 + $0x388] sm:$0xff] }
  0x3b   :  { %675 = vmatpush1.bf16.msra.mxu0 %v344_v8  ;;  %798 = vmatpush1.bf16.msra.mxu1 %v346_v9  ;;  %v163_v8 = vld [vmem:[#allocation2 + $0x298] sm:$0xff]  ;;  %v160_v9 = vld [vmem:[#allocation2 + $0x280] sm:$0xff] }
  0x3c   :  { %676 = vmatprep.subr.bf16.mxu0 %v353_v10  ;;  %799 = vmatprep.subr.bf16.mxu1 %v355_v11  ;;  %v162_v10 = vld [vmem:[#allocation2 + $0x290] sm:$0xff]  ;;  %v424_v11 = vunpack.c.h.s8.bf16 %v152_v62  ;;  %v443_v18 = vunpack.c.h.s8.bf16 %v163_v8  ;;  %v195_v62 = vld [vmem:[#allocation2 + $0x398] sm:$0xff] }
  0x3d   :  { %v434_v16 = vunpack.c.l.s8.bf16 %v162_v10 }
  0x3f   :  { %677 = vmatpush1.bf16.msra.mxu0 %v352_v12  ;;  %800 = vmatpush1.bf16.msra.mxu1 %v354_v13  ;;  %v426_v12 = vunpack.c.h.s8.bf16 %v154_v63  ;;  %v433_v13 = vunpack.c.l.s8.bf16 %v161_v7  ;;  %v488_v63 = vunpack.c.h.s8.bf16 %v184_v54  ;;  %v507_v7 = vunpack.c.h.s8.bf16 %v195_v62 }
  0x40   :  { %678 = vmatprep.subr.bf16.mxu0 %v361_v14  ;;  %801 = vmatprep.subr.bf16.mxu1 %v363_v15  ;;  %v435_v14 = vunpack.c.l.s8.bf16 %v163_v8  ;;  %v432_v15 = vunpack.c.l.s8.bf16 %v160_v9  ;;  %v201_v8 = vld [vmem:[#allocation2 + $0x3c8] sm:$0xff] }
  0x43   :  { %679 = vmatpush1.bf16.msra.mxu0 %v360_v20  ;;  %802 = vmatpush1.bf16.msra.mxu1 %v362_v21  ;;  %v171_v20 = vld [vmem:[#allocation2 + $0x2d8] sm:$0xff]  ;;  %v168_v21 = vld [vmem:[#allocation2 + $0x2c0] sm:$0xff] }
  0x44   :  { %680 = vmatprep.subr.bf16.mxu0 %v369_v22  ;;  %803 = vmatprep.subr.bf16.mxu1 %v371_v23  ;;  %v170_v22 = vld [vmem:[#allocation2 + $0x2d0] sm:$0xff]  ;;  %v440_v23 = vunpack.c.h.s8.bf16 %v160_v9  ;;  %v459_v31 = vunpack.c.h.s8.bf16 %v171_v20  ;;  %v203_v9 = vld [vmem:[#allocation2 + $0x3d8] sm:$0xff] }
  0x45   :  { %v450_v29 = vunpack.c.l.s8.bf16 %v170_v22  ;;  %v458_v39 = vunpack.c.h.s8.bf16 %v170_v22  ;;  %v2892_v22 = vld.sshfl [vmem:[%s3276_s0 + $0x8] sm:$0x33 pattern:$0x76325410] }
  0x47   :  { %681 = vmatpush1.bf16.msra.mxu0 %v368_v24  ;;  %804 = vmatpush1.bf16.msra.mxu1 %v370_v25  ;;  %v442_v24 = vunpack.c.h.s8.bf16 %v162_v10  ;;  %v449_v25 = vunpack.c.l.s8.bf16 %v169_v19  ;;  %v523_v19 = vunpack.c.h.s8.bf16 %v203_v9 }
  0x48   :  { %682 = vmatprep.subr.bf16.mxu0 %v377_v27  ;;  %805 = vmatprep.subr.bf16.mxu1 %v379_v28  ;;  %v451_v27 = vunpack.c.l.s8.bf16 %v171_v20  ;;  %v448_v28 = vunpack.c.l.s8.bf16 %v168_v21  ;;  %v209_v20 = vld [vmem:[#allocation2 + $0x408] sm:$0xff] }
  0x4b   :  { %683 = vmatpush1.bf16.msra.mxu0 %v376_v33  ;;  %806 = vmatpush1.bf16.msra.mxu1 %v378_v34  ;;  %v179_v33 = vld [vmem:[#allocation2 + $0x318] sm:$0xff]  ;;  %v176_v34 = vld [vmem:[#allocation2 + $0x300] sm:$0xff] }
  0x4c   :  { %684 = vmatprep.subr.bf16.mxu0 %v385_v37  ;;  %807 = vmatprep.subr.bf16.mxu1 %v387_v38  ;;  %v178_v37 = vld [vmem:[#allocation2 + $0x310] sm:$0xff]  ;;  %v456_v38 = vunpack.c.h.s8.bf16 %v168_v21  ;;  %v475_v46 = vunpack.c.h.s8.bf16 %v179_v33  ;;  %v211_v21 = vld [vmem:[#allocation2 + $0x418] sm:$0xff] }
  0x4f   :  { %685 = vmatpush1.bf16.msra.mxu0 %v384_v40  ;;  %808 = vmatpush1.bf16.msra.mxu1 %v386_v42  ;;  %v465_v40 = vunpack.c.l.s8.bf16 %v177_v32  ;;  %v467_v42 = vunpack.c.l.s8.bf16 %v179_v33 }
  0x50   :  { %686 = vmatprep.subr.bf16.mxu0 %v393_v43  ;;  %809 = vmatprep.subr.bf16.mxu1 %v395_v44  ;;  %v464_v43 = vunpack.c.l.s8.bf16 %v176_v34  ;;  %v466_v44 = vunpack.c.l.s8.bf16 %v178_v37 }
  0x53   :  { %687 = vmatpush1.bf16.msra.mxu0 %v392_v48  ;;  %810 = vmatpush1.bf16.msra.mxu1 %v394_v49  ;;  %v185_v48 = vld [vmem:[#allocation2 + $0x348] sm:$0xff]  ;;  %v187_v49 = vld [vmem:[#allocation2 + $0x358] sm:$0xff] }
  0x54   :  { %697 = vmatprep.subr.bf16.mxu0 %v401_v36  ;;  %820 = vmatprep.subr.bf16.mxu1 %v403_v50  ;;  %v472_v36 = vunpack.c.h.s8.bf16 %v176_v34  ;;  %v474_v50 = vunpack.c.h.s8.bf16 %v178_v37  ;;  %v481_v52 = vunpack.c.l.s8.bf16 %v185_v48  ;;  %v483_v53 = vunpack.c.l.s8.bf16 %v187_v49 }
  0x55   :  { %v491_v59 = vunpack.c.h.s8.bf16 %v187_v49  ;;  %v537_v34 = vunpack.c.h.s8.bf16 %v209_v20  ;;  %v539_v37 = vunpack.c.h.s8.bf16 %v211_v21 }
  0x56   :  { %689 = vmatmul.mubr.bf16.vlgmr.msra.gmra.mrb[0].mxu0 %v2881_v55  ;;  %812 = vmatmul.mubr.bf16.vlgmr.msra.gmra.mrb[0].mxu1 %v2881_v55 }
  0x57   :  { %698 = vmatpush1.bf16.msra.mxu0 %v400_v35  ;;  %821 = vmatpush1.bf16.msra.mxu1 %v402_v56  ;;  %v186_v35 = vld [vmem:[#allocation2 + $0x350] sm:$0xff]  ;;  %v480_v56 = vunpack.c.l.s8.bf16 %v184_v54 }
  0x58   :  { %699 = vmatprep.subr.bf16.mxu0 %v409_v57  ;;  %822 = vmatprep.subr.bf16.mxu1 %v411_v58  ;;  %v482_v57 = vunpack.c.l.s8.bf16 %v186_v35  ;;  %v489_v58 = vunpack.c.h.s8.bf16 %v185_v48 }
  0x59   :  { %729 = vmatprep.mubr.bf16.mxu0 %v2883_v61  ;;  %852 = vmatprep.mubr.bf16.mxu1 %v2883_v61 }
  0x5b   :  { %700 = vmatpush1.bf16.msra.mxu0 %v408_v41  ;;  %823 = vmatpush1.bf16.msra.mxu1 %v410_v0  ;;  %v490_v41 = vunpack.c.h.s8.bf16 %v186_v35  ;;  %v497_v0 = vunpack.c.l.s8.bf16 %v193_v60 }
  0x5c   :  { %701 = vmatprep.subr.bf16.mxu0 %v417_v1  ;;  %824 = vmatprep.subr.bf16.mxu1 %v419_v2  ;;  %v499_v1 = vunpack.c.l.s8.bf16 %v195_v62  ;;  %v192_v2 = vld [vmem:[#allocation2 + $0x380] sm:$0xff] }
  0x5d   :  { %v504_v10 = vunpack.c.h.s8.bf16 %v192_v2 }
  0x5f   :  { %702 = vmatpush1.bf16.msra.mxu0 %v416_v3  ;;  %825 = vmatpush1.bf16.msra.mxu1 %v418_v4  ;;  %v194_v3 = vld [vmem:[#allocation2 + $0x390] sm:$0xff]  ;;  %v496_v4 = vunpack.c.l.s8.bf16 %v192_v2 }
  0x60   :  { %703 = vmatprep.subr.bf16.mxu0 %v425_v5  ;;  %826 = vmatprep.subr.bf16.mxu1 %v427_v6  ;;  %v498_v5 = vunpack.c.l.s8.bf16 %v194_v3  ;;  %v505_v6 = vunpack.c.h.s8.bf16 %v193_v60 }
  0x63   :  { %704 = vmatpush1.bf16.msra.mxu0 %v424_v11  ;;  %827 = vmatpush1.bf16.msra.mxu1 %v426_v12  ;;  %v506_v11 = vunpack.c.h.s8.bf16 %v194_v3  ;;  %v513_v12 = vunpack.c.l.s8.bf16 %v201_v8 }
  0x64   :  { %705 = vmatprep.subr.bf16.mxu0 %v433_v13  ;;  %828 = vmatprep.subr.bf16.mxu1 %v435_v14  ;;  %v515_v13 = vunpack.c.l.s8.bf16 %v203_v9  ;;  %v200_v14 = vld [vmem:[#allocation2 + $0x3c0] sm:$0xff] }
  0x67   :  { %706 = vmatpush1.bf16.msra.mxu0 %v432_v15  ;;  %829 = vmatpush1.bf16.msra.mxu1 %v434_v16  ;;  %v202_v15 = vld [vmem:[#allocation2 + $0x3d0] sm:$0xff]  ;;  %v512_v16 = vunpack.c.l.s8.bf16 %v200_v14 }
  0x68   :  { %707 = vmatprep.subr.bf16.mxu0 %v441_v17  ;;  %830 = vmatprep.subr.bf16.mxu1 %v443_v18  ;;  %v514_v17 = vunpack.c.l.s8.bf16 %v202_v15  ;;  %v521_v18 = vunpack.c.h.s8.bf16 %v201_v8 }
  0x6b   :  { %708 = vmatpush1.bf16.msra.mxu0 %v440_v23  ;;  %831 = vmatpush1.bf16.msra.mxu1 %v442_v24  ;;  %v520_v23 = vunpack.c.h.s8.bf16 %v200_v14  ;;  %v522_v24 = vunpack.c.h.s8.bf16 %v202_v15 }
  0x6c   :  { %709 = vmatprep.subr.bf16.mxu0 %v449_v25  ;;  %832 = vmatprep.subr.bf16.mxu1 %v451_v27  ;;  %v529_v25 = vunpack.c.l.s8.bf16 %v209_v20  ;;  %v531_v27 = vunpack.c.l.s8.bf16 %v211_v21 }
  0x6f   :  { %710 = vmatpush1.bf16.msra.mxu0 %v448_v28  ;;  %833 = vmatpush1.bf16.msra.mxu1 %v450_v29  ;;  %v208_v28 = vld [vmem:[#allocation2 + $0x400] sm:$0xff]  ;;  %v210_v29 = vld [vmem:[#allocation2 + $0x410] sm:$0xff] }
  0x70   :  { %711 = vmatprep.subr.bf16.mxu0 %v457_v30  ;;  %834 = vmatprep.subr.bf16.mxu1 %v459_v31  ;;  %v67_v30 = vcombine.high %v2892_v22, %v2892_v22  ;;  %v2898_v31 = vpack.c.bf16 %v2875_v47, %v2875_v47  ;;  %v528_v32 = vunpack.c.l.s8.bf16 %v208_v28  ;;  %v530_v33 = vunpack.c.l.s8.bf16 %v210_v29 }
  0x71   :  { %v536_v47 = vunpack.c.h.s8.bf16 %v208_v28 }
  0x73   :  { %712 = vmatpush1.bf16.msra.mxu0 %v456_v38  ;;  %835 = vmatpush1.bf16.msra.mxu1 %v458_v39  ;;  %v217_v38 = vld [vmem:[#allocation2 + $0x448] sm:$0xff]  ;;  %v219_v39 = vld [vmem:[#allocation2 + $0x458] sm:$0xff] }
  0x74   :  { %713 = vmatprep.subr.bf16.mxu0 %v465_v40  ;;  %836 = vmatprep.subr.bf16.mxu1 %v467_v42  ;;  %v2900_v40 = vpack.c.bf16 %v67_v30, %v67_v30  ;;  %v538_v42 = vunpack.c.h.s8.bf16 %v210_v29 }
  0x77   :  { %714 = vmatpush1.bf16.msra.mxu0 %v464_v43  ;;  %837 = vmatpush1.bf16.msra.mxu1 %v466_v44  ;;  %v545_v43 = vunpack.c.l.s8.bf16 %v217_v38  ;;  %v547_v44 = vunpack.c.l.s8.bf16 %v219_v39 }
  0x78   :  { %715 = vmatprep.subr.bf16.mxu0 %v473_v45  ;;  %838 = vmatprep.subr.bf16.mxu1 %v475_v46  ;;  %v216_v45 = vld [vmem:[#allocation2 + $0x440] sm:$0xff]  ;;  %v218_v46 = vld [vmem:[#allocation2 + $0x450] sm:$0xff] }
  0x79   :  { %v544_v48 = vunpack.c.l.s8.bf16 %v216_v45  ;;  %v546_v49 = vunpack.c.l.s8.bf16 %v218_v46  ;;  %v552_v54 = vunpack.c.h.s8.bf16 %v216_v45  ;;  %v554_v35 = vunpack.c.h.s8.bf16 %v218_v46 }
  0x7b   :  { %716 = vmatpush1.bf16.msra.mxu0 %v472_v36  ;;  %839 = vmatpush1.bf16.msra.mxu1 %v474_v50  ;;  %v553_v36 = vunpack.c.h.s8.bf16 %v217_v38  ;;  %v555_v50 = vunpack.c.h.s8.bf16 %v219_v39 }
  0x7c   :  { %717 = vmatprep.subr.bf16.mxu0 %v481_v52  ;;  %840 = vmatprep.subr.bf16.mxu1 %v483_v53  ;;  %v225_v52 = vld [vmem:[#allocation2 + $0x488] sm:$0xff]  ;;  %v227_v53 = vld [vmem:[#allocation2 + $0x498] sm:$0xff] }
  0x7f   :  { %718 = vmatpush1.bf16.msra.mxu0 %v480_v56  ;;  %841 = vmatpush1.bf16.msra.mxu1 %v482_v57  ;;  %v561_v56 = vunpack.c.l.s8.bf16 %v225_v52  ;;  %v563_v57 = vunpack.c.l.s8.bf16 %v227_v53 }
  0x80   :  { %719 = vmatprep.subr.bf16.mxu0 %v489_v58  ;;  %842 = vmatprep.subr.bf16.mxu1 %v491_v59  ;;  %v224_v58 = vld [vmem:[#allocation2 + $0x480] sm:$0xff]  ;;  %v226_v59 = vld [vmem:[#allocation2 + $0x490] sm:$0xff] }
  0x81   :  { %v560_v60 = vunpack.c.l.s8.bf16 %v224_v58  ;;  %v562_v62 = vunpack.c.l.s8.bf16 %v226_v59  ;;  %v568_v2 = vunpack.c.h.s8.bf16 %v224_v58  ;;  %v570_v3 = vunpack.c.h.s8.bf16 %v226_v59 }
  0x83   :  { %720 = vmatpush1.bf16.msra.mxu0 %v488_v63  ;;  %843 = vmatpush1.bf16.msra.mxu1 %v490_v41  ;;  %v569_v63 = vunpack.c.h.s8.bf16 %v225_v52  ;;  %v571_v41 = vunpack.c.h.s8.bf16 %v227_v53 }
  0x84   :  { %721 = vmatprep.subr.bf16.mxu0 %v497_v0  ;;  %844 = vmatprep.subr.bf16.mxu1 %v499_v1  ;;  %v233_v0 = vld [vmem:[#allocation2 + $0x4c8] sm:$0xff]  ;;  %v235_v1 = vld [vmem:[#allocation2 + $0x4d8] sm:$0xff] }
  0x87   :  { %722 = vmatpush1.bf16.msra.mxu0 %v496_v4  ;;  %845 = vmatpush1.bf16.msra.mxu1 %v498_v5  ;;  %v577_v4 = vunpack.c.l.s8.bf16 %v233_v0  ;;  %v579_v5 = vunpack.c.l.s8.bf16 %v235_v1 }
  0x88   :  { %723 = vmatprep.subr.bf16.mxu0 %v505_v6  ;;  %846 = vmatprep.subr.bf16.mxu1 %v507_v7  ;;  %v232_v6 = vld [vmem:[#allocation2 + $0x4c0] sm:$0xff]  ;;  %v234_v7 = vld [vmem:[#allocation2 + $0x4d0] sm:$0xff] }
  0x89   :  { %v576_v8 = vunpack.c.l.s8.bf16 %v232_v6  ;;  %v578_v9 = vunpack.c.l.s8.bf16 %v234_v7  ;;  %v584_v14 = vunpack.c.h.s8.bf16 %v232_v6  ;;  %v586_v15 = vunpack.c.h.s8.bf16 %v234_v7 }
  0x8b   :  { %724 = vmatpush1.bf16.msra.mxu0 %v504_v10  ;;  %847 = vmatpush1.bf16.msra.mxu1 %v506_v11  ;;  %v585_v10 = vunpack.c.h.s8.bf16 %v233_v0  ;;  %v587_v11 = vunpack.c.h.s8.bf16 %v235_v1 }
  0x8c   :  { %725 = vmatprep.subr.bf16.mxu0 %v513_v12  ;;  %848 = vmatprep.subr.bf16.mxu1 %v515_v13  ;;  %v241_v12 = vld [vmem:[#allocation2 + $0x508] sm:$0xff]  ;;  %v243_v13 = vld [vmem:[#allocation2 + $0x518] sm:$0xff] }
  0x8f   :  { %726 = vmatpush1.bf16.msra.mxu0 %v512_v16  ;;  %849 = vmatpush1.bf16.msra.mxu1 %v514_v17  ;;  %v593_v16 = vunpack.c.l.s8.bf16 %v241_v12  ;;  %v595_v17 = vunpack.c.l.s8.bf16 %v243_v13 }
  0x90   :  { %727 = vmatprep.subr.bf16.mxu0 %v521_v18  ;;  %850 = vmatprep.subr.bf16.mxu1 %v523_v19  ;;  %v240_v18 = vld [vmem:[#allocation2 + $0x500] sm:$0xff]  ;;  %v242_v19 = vld [vmem:[#allocation2 + $0x510] sm:$0xff] }
  0x91   :  { %v592_v20 = vunpack.c.l.s8.bf16 %v240_v18  ;;  %v594_v21 = vunpack.c.l.s8.bf16 %v242_v19  ;;  %v600_v28 = vunpack.c.h.s8.bf16 %v240_v18  ;;  %v602_v29 = vunpack.c.h.s8.bf16 %v242_v19 }
  0x93   :  { %728 = vmatpush1.bf16.msra.mxu0 %v520_v23  ;;  %851 = vmatpush1.bf16.msra.mxu1 %v522_v24  ;;  %v601_v23 = vunpack.c.h.s8.bf16 %v241_v12  ;;  %v603_v24 = vunpack.c.h.s8.bf16 %v243_v13 }
  0x94   :  { %738 = vmatprep.subr.bf16.mxu0 %v529_v25  ;;  %861 = vmatprep.subr.bf16.mxu1 %v531_v27  ;;  %v249_v25 = vld [vmem:[#allocation2 + $0x548] sm:$0xff]  ;;  %v251_v27 = vld [vmem:[#allocation2 + $0x558] sm:$0xff] }
  0x95   :  { %v609_v30 = vunpack.c.l.s8.bf16 %v249_v25  ;;  %v617_v39 = vunpack.c.h.s8.bf16 %v249_v25 }
  0x96   :  { %730 = vmatmul.mubr.bf16.vlgmr.msra.gmra.mrb[0].mxu0 %v2898_v31  ;;  %853 = vmatmul.mubr.bf16.vlgmr.msra.gmra.mrb[0].mxu1 %v2898_v31 }
  0x97   :  { %739 = vmatpush1.bf16.msra.mxu0 %v528_v32  ;;  %862 = vmatpush1.bf16.msra.mxu1 %v530_v33  ;;  %v611_v32 = vunpack.c.l.s8.bf16 %v251_v27  ;;  %v248_v33 = vld [vmem:[#allocation2 + $0x540] sm:$0xff] }
  0x98   :  { %740 = vmatprep.subr.bf16.mxu0 %v537_v34  ;;  %863 = vmatprep.subr.bf16.mxu1 %v539_v37  ;;  %v250_v34 = vld [vmem:[#allocation2 + $0x550] sm:$0xff]  ;;  %v608_v37 = vunpack.c.l.s8.bf16 %v248_v33 }
  0x99   :  { %770 = vmatprep.mubr.bf16.mxu0 %v2900_v40  ;;  %893 = vmatprep.mubr.bf16.mxu1 %v2900_v40  ;;  %v610_v38 = vunpack.c.l.s8.bf16 %v250_v34  ;;  %v618_v45 = vunpack.c.h.s8.bf16 %v250_v34 }
  0x9b   :  { %741 = vmatpush1.bf16.msra.mxu0 %v536_v47  ;;  %864 = vmatpush1.bf16.msra.mxu1 %v538_v42  ;;  %v619_v47 = vunpack.c.h.s8.bf16 %v251_v27  ;;  %v257_v42 = vld [vmem:[#allocation2 + $0x588] sm:$0xff] }
  0x9c   :  { %742 = vmatprep.subr.bf16.mxu0 %v545_v43  ;;  %865 = vmatprep.subr.bf16.mxu1 %v547_v44  ;;  %v259_v43 = vld [vmem:[#allocation2 + $0x598] sm:$0xff]  ;;  %v616_v44 = vunpack.c.h.s8.bf16 %v248_v33  ;;  %v625_v46 = vunpack.c.l.s8.bf16 %v257_v42  ;;  %v633_v53 = vunpack.c.h.s8.bf16 %v257_v42 }
  0x9f   :  { %743 = vmatpush1.bf16.msra.mxu0 %v544_v48  ;;  %866 = vmatpush1.bf16.msra.mxu1 %v546_v49  ;;  %v627_v48 = vunpack.c.l.s8.bf16 %v259_v43  ;;  %v256_v49 = vld [vmem:[#allocation2 + $0x580] sm:$0xff] }
  0xa0   :  { %744 = vmatprep.subr.bf16.mxu0 %v553_v36  ;;  %867 = vmatprep.subr.bf16.mxu1 %v555_v50  ;;  %v258_v36 = vld [vmem:[#allocation2 + $0x590] sm:$0xff]  ;;  %v624_v50 = vunpack.c.l.s8.bf16 %v256_v49 }
  0xa1   :  { %v626_v52 = vunpack.c.l.s8.bf16 %v258_v36  ;;  %v634_v58 = vunpack.c.h.s8.bf16 %v258_v36 }
  0xa3   :  { %745 = vmatpush1.bf16.msra.mxu0 %v552_v54  ;;  %868 = vmatpush1.bf16.msra.mxu1 %v554_v35  ;;  %v635_v54 = vunpack.c.h.s8.bf16 %v259_v43  ;;  %v265_v35 = vld [vmem:[#allocation2 + $0x5c8] sm:$0xff] }
  0xa4   :  { %746 = vmatprep.subr.bf16.mxu0 %v561_v56  ;;  %869 = vmatprep.subr.bf16.mxu1 %v563_v57  ;;  %v267_v56 = vld [vmem:[#allocation2 + $0x5d8] sm:$0xff]  ;;  %v632_v57 = vunpack.c.h.s8.bf16 %v256_v49  ;;  %v641_v59 = vunpack.c.l.s8.bf16 %v265_v35  ;;  %v649_v1 = vunpack.c.h.s8.bf16 %v265_v35 }
  0xa7   :  { %747 = vmatpush1.bf16.msra.mxu0 %v560_v60  ;;  %870 = vmatpush1.bf16.msra.mxu1 %v562_v62  ;;  %v643_v60 = vunpack.c.l.s8.bf16 %v267_v56  ;;  %v264_v62 = vld [vmem:[#allocation2 + $0x5c0] sm:$0xff] }
  0xa8   :  { %748 = vmatprep.subr.bf16.mxu0 %v569_v63  ;;  %871 = vmatprep.subr.bf16.mxu1 %v571_v41  ;;  %v266_v63 = vld [vmem:[#allocation2 + $0x5d0] sm:$0xff]  ;;  %v640_v41 = vunpack.c.l.s8.bf16 %v264_v62 }
  0xa9   :  { %v642_v0 = vunpack.c.l.s8.bf16 %v266_v63  ;;  %v650_v6 = vunpack.c.h.s8.bf16 %v266_v63 }
  0xab   :  { %749 = vmatpush1.bf16.msra.mxu0 %v568_v2  ;;  %872 = vmatpush1.bf16.msra.mxu1 %v570_v3  ;;  %v651_v2 = vunpack.c.h.s8.bf16 %v267_v56  ;;  %v85_v3 = vld [vmem:[#allocation2 + $0x28] sm:$0xff] }
  0xac   :  { %750 = vmatprep.subr.bf16.mxu0 %v577_v4  ;;  %873 = vmatprep.subr.bf16.mxu1 %v579_v5  ;;  %v87_v4 = vld [vmem:[#allocation2 + $0x38] sm:$0xff]  ;;  %v648_v5 = vunpack.c.h.s8.bf16 %v264_v62  ;;  %v277_v7 = vunpack.c.l.s8.bf16 %v85_v3 }
  0xaf   :  { %751 = vmatpush1.bf16.msra.mxu0 %v576_v8  ;;  %874 = vmatpush1.bf16.msra.mxu1 %v578_v9  ;;  %v279_v8 = vunpack.c.l.s8.bf16 %v87_v4  ;;  %v84_v9 = vld [vmem:[#allocation2 + $0x20] sm:$0xff] }
  0xb0   :  { %752 = vmatprep.subr.bf16.mxu0 %v585_v10  ;;  %875 = vmatprep.subr.bf16.mxu1 %v587_v11  ;;  %v86_v10 = vld [vmem:[#allocation2 + $0x30] sm:$0xff]  ;;  %v2908_v11 = vpack.c.bf16 %v2892_v22, %v2892_v22  ;;  %v276_v12 = vunpack.c.l.s8.bf16 %v84_v9  ;;  %v284_v18 = vunpack.c.h.s8.bf16 %v84_v9 }
  0xb1   :  { %v278_v13 = vunpack.c.l.s8.bf16 %v86_v10  ;;  %v286_v19 = vunpack.c.h.s8.bf16 %v86_v10 }
  0xb3   :  { %753 = vmatpush1.bf16.msra.mxu0 %v584_v14  ;;  %876 = vmatpush1.bf16.msra.mxu1 %v586_v15  ;;  %v285_v14 = vunpack.c.h.s8.bf16 %v85_v3  ;;  %v287_v15 = vunpack.c.h.s8.bf16 %v87_v4 }
  0xb4   :  { %754 = vmatprep.subr.bf16.mxu0 %v593_v16  ;;  %877 = vmatprep.subr.bf16.mxu1 %v595_v17  ;;  %v93_v16 = vld [vmem:[#allocation2 + $0x68] sm:$0xff]  ;;  %v95_v17 = vld [vmem:[#allocation2 + $0x78] sm:$0xff] }
  0xb5   :  { %v293_v22 = vunpack.c.l.s8.bf16 %v93_v16  ;;  %v301_v27 = vunpack.c.h.s8.bf16 %v93_v16 }
  0xb7   :  { %755 = vmatpush1.bf16.msra.mxu0 %v592_v20  ;;  %878 = vmatpush1.bf16.msra.mxu1 %v594_v21  ;;  %v295_v20 = vunpack.c.l.s8.bf16 %v95_v17  ;;  %v92_v21 = vld [vmem:[#allocation2 + $0x60] sm:$0xff] }
  0xb8   :  { %756 = vmatprep.subr.bf16.mxu0 %v601_v23  ;;  %879 = vmatprep.subr.bf16.mxu1 %v603_v24  ;;  %v94_v23 = vld [vmem:[#allocation2 + $0x70] sm:$0xff]  ;;  %v292_v24 = vunpack.c.l.s8.bf16 %v92_v21 }
  0xb9   :  { %v294_v25 = vunpack.c.l.s8.bf16 %v94_v23  ;;  %v302_v33 = vunpack.c.h.s8.bf16 %v94_v23 }
  0xbb   :  { %757 = vmatpush1.bf16.msra.mxu0 %v600_v28  ;;  %880 = vmatpush1.bf16.msra.mxu1 %v602_v29  ;;  %v303_v28 = vunpack.c.h.s8.bf16 %v95_v17  ;;  %v101_v29 = vld [vmem:[#allocation2 + $0xa8] sm:$0xff] }
  0xbc   :  { %758 = vmatprep.subr.bf16.mxu0 %v609_v30  ;;  %881 = vmatprep.subr.bf16.mxu1 %v611_v32  ;;  %v103_v30 = vld [vmem:[#allocation2 + $0xb8] sm:$0xff]  ;;  %v300_v32 = vunpack.c.h.s8.bf16 %v92_v21  ;;  %v309_v34 = vunpack.c.l.s8.bf16 %v101_v29  ;;  %v317_v42 = vunpack.c.h.s8.bf16 %v101_v29 }
  0xbd   :  { %v319_v43 = vunpack.c.h.s8.bf16 %v103_v30 }
  0xbf   :  { %759 = vmatpush1.bf16.msra.mxu0 %v608_v37  ;;  %882 = vmatpush1.bf16.msra.mxu1 %v610_v38  ;;  %v311_v37 = vunpack.c.l.s8.bf16 %v103_v30  ;;  %v100_v38 = vld [vmem:[#allocation2 + $0xa0] sm:$0xff] }
  0xc0   :  { %760 = vmatprep.subr.bf16.mxu0 %v617_v39  ;;  %883 = vmatprep.subr.bf16.mxu1 %v619_v47  ;;  %v308_v39 = vunpack.c.l.s8.bf16 %v100_v38 }
  0xc3   :  { %761 = vmatpush1.bf16.msra.mxu0 %v616_v44  ;;  %884 = vmatpush1.bf16.msra.mxu1 %v618_v45  ;;  %v109_v44 = vld [vmem:[#allocation2 + $0xe8] sm:$0xff]  ;;  %v111_v45 = vld [vmem:[#allocation2 + $0xf8] sm:$0xff] }
  0xc4   :  { %762 = vmatprep.subr.bf16.mxu0 %v625_v46  ;;  %885 = vmatprep.subr.bf16.mxu1 %v627_v48  ;;  %v316_v46 = vunpack.c.h.s8.bf16 %v100_v38  ;;  %v325_v49 = vunpack.c.l.s8.bf16 %v109_v44  ;;  %v327_v36 = vunpack.c.l.s8.bf16 %v111_v45  ;;  %v333_v35 = vunpack.c.h.s8.bf16 %v109_v44 }
  0xc5   :  { %v335_v56 = vunpack.c.h.s8.bf16 %v111_v45 }
  0xc7   :  { %763 = vmatpush1.bf16.msra.mxu0 %v624_v50  ;;  %886 = vmatpush1.bf16.msra.mxu1 %v626_v52  ;;  %v108_v50 = vld [vmem:[#allocation2 + $0xe0] sm:$0xff]  ;;  %v110_v52 = vld [vmem:[#allocation2 + $0xf0] sm:$0xff] }
  0xc8   :  { %764 = vmatprep.subr.bf16.mxu0 %v633_v53  ;;  %887 = vmatprep.subr.bf16.mxu1 %v635_v54  ;;  %v324_v53 = vunpack.c.l.s8.bf16 %v108_v50  ;;  %v326_v54 = vunpack.c.l.s8.bf16 %v110_v52 }
  0xcb   :  { %765 = vmatpush1.bf16.msra.mxu0 %v632_v57  ;;  %888 = vmatpush1.bf16.msra.mxu1 %v634_v58  ;;  %v117_v57 = vld [vmem:[#allocation2 + $0x128] sm:$0xff]  ;;  %v119_v58 = vld [vmem:[#allocation2 + $0x138] sm:$0xff] }
  0xcc   :  { %766 = vmatprep.subr.bf16.mxu0 %v641_v59  ;;  %889 = vmatprep.subr.bf16.mxu1 %v643_v60  ;;  %v332_v59 = vunpack.c.h.s8.bf16 %v108_v50  ;;  %v334_v60 = vunpack.c.h.s8.bf16 %v110_v52  ;;  %v341_v62 = vunpack.c.l.s8.bf16 %v117_v57  ;;  %v343_v63 = vunpack.c.l.s8.bf16 %v119_v58 }
  0xcd   :  { %v349_v3 = vunpack.c.h.s8.bf16 %v117_v57  ;;  %v351_v4 = vunpack.c.h.s8.bf16 %v119_v58 }
  0xcf   :  { %767 = vmatpush1.bf16.msra.mxu0 %v640_v41  ;;  %890 = vmatpush1.bf16.msra.mxu1 %v642_v0  ;;  %v116_v41 = vld [vmem:[#allocation2 + $0x120] sm:$0xff]  ;;  %v118_v0 = vld [vmem:[#allocation2 + $0x130] sm:$0xff] }
  0xd0   :  { %768 = vmatprep.subr.bf16.mxu0 %v649_v1  ;;  %891 = vmatprep.subr.bf16.mxu1 %v651_v2  ;;  %v340_v1 = vunpack.c.l.s8.bf16 %v116_v41  ;;  %v342_v2 = vunpack.c.l.s8.bf16 %v118_v0 }
  0xd3   :  { %769 = vmatpush1.bf16.msra.mxu0 %v648_v5  ;;  %892 = vmatpush1.bf16.msra.mxu1 %v650_v6  ;;  %v125_v5 = vld [vmem:[#allocation2 + $0x168] sm:$0xff]  ;;  %v127_v6 = vld [vmem:[#allocation2 + $0x178] sm:$0xff] }
  0xd4   :  { %902 = vmatprep.subr.bf16.mxu0 %v277_v7  ;;  %1025 = vmatprep.subr.bf16.mxu1 %v279_v8  ;;  %v348_v7 = vunpack.c.h.s8.bf16 %v116_v41  ;;  %v350_v8 = vunpack.c.h.s8.bf16 %v118_v0  ;;  %v357_v9 = vunpack.c.l.s8.bf16 %v125_v5  ;;  %v359_v10 = vunpack.c.l.s8.bf16 %v127_v6 }
  0xd5   :  { %v365_v16 = vunpack.c.h.s8.bf16 %v125_v5  ;;  %v367_v17 = vunpack.c.h.s8.bf16 %v127_v6  ;;  %v165_v6 = vld [vmem:[#allocation2 + $0x2a8] sm:$0xff] }
  0xd6   :  { %771 = vmatmul.mubr.bf16.vlgmr.msra.gmra.mrb[0].mxu0 %v2908_v11  ;;  %894 = vmatmul.mubr.bf16.vlgmr.msra.gmra.mrb[0].mxu1 %v2908_v11 }
  0xd7   :  { %903 = vmatpush1.bf16.msra.mxu0 %v276_v12  ;;  %1026 = vmatpush1.bf16.msra.mxu1 %v278_v13  ;;  %v124_v12 = vld [vmem:[#allocation2 + $0x160] sm:$0xff]  ;;  %v126_v13 = vld [vmem:[#allocation2 + $0x170] sm:$0xff] }
  0xd8   :  { %904 = vmatprep.subr.bf16.mxu0 %v285_v14  ;;  %1027 = vmatprep.subr.bf16.mxu1 %v287_v15  ;;  %v356_v14 = vunpack.c.l.s8.bf16 %v124_v12  ;;  %v358_v15 = vunpack.c.l.s8.bf16 %v126_v13 }
  0xd9   :  { %934 = vmatprep.mubr.bf16.mxu0 %v2868_v51  ;;  %1057 = vmatprep.mubr.bf16.mxu1 %v2868_v51  ;;  %v102_v51 = vld [vmem:[#allocation2 + $0xb0] sm:$0xff] }
  0xda   :  { %v310_v47 = vunpack.c.l.s8.bf16 %v102_v51  ;;  %v318_v48 = vunpack.c.h.s8.bf16 %v102_v51 }
  0xdb   :  { %905 = vmatpush1.bf16.msra.mxu0 %v284_v18  ;;  %1028 = vmatpush1.bf16.msra.mxu1 %v286_v19  ;;  %v133_v18 = vld [vmem:[#allocation2 + $0x1a8] sm:$0xff]  ;;  %v135_v19 = vld [vmem:[#allocation2 + $0x1b8] sm:$0xff] }
  0xdc   :  { %906 = vmatprep.subr.bf16.mxu0 %v293_v22  ;;  %1029 = vmatprep.subr.bf16.mxu1 %v295_v20  ;;  %v364_v22 = vunpack.c.h.s8.bf16 %v124_v12  ;;  %v366_v20 = vunpack.c.h.s8.bf16 %v126_v13  ;;  %v373_v21 = vunpack.c.l.s8.bf16 %v133_v18  ;;  %v375_v23 = vunpack.c.l.s8.bf16 %v135_v19  ;;  %v164_v13 = vld [vmem:[#allocation2 + $0x2a0] sm:$0xff] }
  0xdd   :  { %v381_v29 = vunpack.c.h.s8.bf16 %v133_v18  ;;  %v383_v30 = vunpack.c.h.s8.bf16 %v135_v19  ;;  %v173_v18 = vld [vmem:[#allocation2 + $0x2e8] sm:$0xff]  ;;  %v175_v19 = vld [vmem:[#allocation2 + $0x2f8] sm:$0xff] }
  0xdf   :  { %907 = vmatpush1.bf16.msra.mxu0 %v292_v24  ;;  %1030 = vmatpush1.bf16.msra.mxu1 %v294_v25  ;;  %v132_v24 = vld [vmem:[#allocation2 + $0x1a0] sm:$0xff]  ;;  %v134_v25 = vld [vmem:[#allocation2 + $0x1b0] sm:$0xff] }
  0xe0   :  { %908 = vmatprep.subr.bf16.mxu0 %v301_v27  ;;  %1031 = vmatprep.subr.bf16.mxu1 %v303_v28  ;;  %v372_v27 = vunpack.c.l.s8.bf16 %v132_v24  ;;  %v374_v28 = vunpack.c.l.s8.bf16 %v134_v25 }
  0xe3   :  { %909 = vmatpush1.bf16.msra.mxu0 %v300_v32  ;;  %1032 = vmatpush1.bf16.msra.mxu1 %v302_v33  ;;  %v141_v32 = vld [vmem:[#allocation2 + $0x1e8] sm:$0xff]  ;;  %v143_v33 = vld [vmem:[#allocation2 + $0x1f8] sm:$0xff] }
  0xe4   :  { %910 = vmatprep.subr.bf16.mxu0 %v309_v34  ;;  %1033 = vmatprep.subr.bf16.mxu1 %v311_v37  ;;  %v380_v34 = vunpack.c.h.s8.bf16 %v132_v24  ;;  %v382_v37 = vunpack.c.h.s8.bf16 %v134_v25  ;;  %v389_v38 = vunpack.c.l.s8.bf16 %v141_v32  ;;  %v391_v51 = vunpack.c.l.s8.bf16 %v143_v33  ;;  %v172_v24 = vld [vmem:[#allocation2 + $0x2e0] sm:$0xff]  ;;  %v174_v25 = vld [vmem:[#allocation2 + $0x2f0] sm:$0xff] }
  0xe5   :  { %v397_v44 = vunpack.c.h.s8.bf16 %v141_v32  ;;  %v399_v45 = vunpack.c.h.s8.bf16 %v143_v33  ;;  %v181_v32 = vld [vmem:[#allocation2 + $0x328] sm:$0xff]  ;;  %v183_v33 = vld [vmem:[#allocation2 + $0x338] sm:$0xff] }
  0xe7   :  { %911 = vmatpush1.bf16.msra.mxu0 %v308_v39  ;;  %1034 = vmatpush1.bf16.msra.mxu1 %v310_v47  ;;  %v140_v39 = vld [vmem:[#allocation2 + $0x1e0] sm:$0xff]  ;;  %v142_v47 = vld [vmem:[#allocation2 + $0x1f0] sm:$0xff] }
  0xe8   :  { %912 = vmatprep.subr.bf16.mxu0 %v317_v42  ;;  %1035 = vmatprep.subr.bf16.mxu1 %v319_v43  ;;  %v388_v42 = vunpack.c.l.s8.bf16 %v140_v39  ;;  %v390_v43 = vunpack.c.l.s8.bf16 %v142_v47 }
  0xeb   :  { %913 = vmatpush1.bf16.msra.mxu0 %v316_v46  ;;  %1036 = vmatpush1.bf16.msra.mxu1 %v318_v48  ;;  %v149_v46 = vld [vmem:[#allocation2 + $0x228] sm:$0xff]  ;;  %v151_v48 = vld [vmem:[#allocation2 + $0x238] sm:$0xff] }
  0xec   :  { %914 = vmatprep.subr.bf16.mxu0 %v325_v49  ;;  %1037 = vmatprep.subr.bf16.mxu1 %v327_v36  ;;  %v396_v49 = vunpack.c.h.s8.bf16 %v140_v39  ;;  %v398_v36 = vunpack.c.h.s8.bf16 %v142_v47  ;;  %v405_v50 = vunpack.c.l.s8.bf16 %v149_v46  ;;  %v407_v52 = vunpack.c.l.s8.bf16 %v151_v48  ;;  %v180_v39 = vld [vmem:[#allocation2 + $0x320] sm:$0xff]  ;;  %v182_v47 = vld [vmem:[#allocation2 + $0x330] sm:$0xff] }
  0xed   :  { %v413_v57 = vunpack.c.h.s8.bf16 %v149_v46  ;;  %v415_v58 = vunpack.c.h.s8.bf16 %v151_v48  ;;  %v189_v46 = vld [vmem:[#allocation2 + $0x368] sm:$0xff]  ;;  %v191_v48 = vld [vmem:[#allocation2 + $0x378] sm:$0xff] }
  0xef   :  { %915 = vmatpush1.bf16.msra.mxu0 %v324_v53  ;;  %1038 = vmatpush1.bf16.msra.mxu1 %v326_v54  ;;  %v148_v53 = vld [vmem:[#allocation2 + $0x220] sm:$0xff]  ;;  %v150_v54 = vld [vmem:[#allocation2 + $0x230] sm:$0xff] }
  0xf0   :  { %916 = vmatprep.subr.bf16.mxu0 %v333_v35  ;;  %1039 = vmatprep.subr.bf16.mxu1 %v335_v56  ;;  %v404_v35 = vunpack.c.l.s8.bf16 %v148_v53  ;;  %v406_v56 = vunpack.c.l.s8.bf16 %v150_v54 }
  0xf3   :  { %917 = vmatpush1.bf16.msra.mxu0 %v332_v59  ;;  %1040 = vmatpush1.bf16.msra.mxu1 %v334_v60  ;;  %v157_v59 = vld [vmem:[#allocation2 + $0x268] sm:$0xff]  ;;  %v159_v60 = vld [vmem:[#allocation2 + $0x278] sm:$0xff] }
  0xf4   :  { %918 = vmatprep.subr.bf16.mxu0 %v341_v62  ;;  %1041 = vmatprep.subr.bf16.mxu1 %v343_v63  ;;  %v412_v62 = vunpack.c.h.s8.bf16 %v148_v53  ;;  %v414_v63 = vunpack.c.h.s8.bf16 %v150_v54  ;;  %v421_v41 = vunpack.c.l.s8.bf16 %v157_v59  ;;  %v423_v0 = vunpack.c.l.s8.bf16 %v159_v60  ;;  %v188_v53 = vld [vmem:[#allocation2 + $0x360] sm:$0xff]  ;;  %v190_v54 = vld [vmem:[#allocation2 + $0x370] sm:$0xff] }
  0xf5   :  { %v431_v5 = vunpack.c.h.s8.bf16 %v159_v60  ;;  %v199_v60 = vld [vmem:[#allocation2 + $0x3b8] sm:$0xff] }
  0xf7   :  { %919 = vmatpush1.bf16.msra.mxu0 %v340_v1  ;;  %1042 = vmatpush1.bf16.msra.mxu1 %v342_v2  ;;  %v156_v1 = vld [vmem:[#allocation2 + $0x260] sm:$0xff]  ;;  %v158_v2 = vld [vmem:[#allocation2 + $0x270] sm:$0xff] }
  0xf8   :  { %920 = vmatprep.subr.bf16.mxu0 %v349_v3  ;;  %1043 = vmatprep.subr.bf16.mxu1 %v351_v4  ;;  %v420_v3 = vunpack.c.l.s8.bf16 %v156_v1  ;;  %v422_v4 = vunpack.c.l.s8.bf16 %v158_v2 }
  0xfb   :  { %921 = vmatpush1.bf16.msra.mxu0 %v348_v7  ;;  %1044 = vmatpush1.bf16.msra.mxu1 %v350_v8  ;;  %v167_v7 = vld [vmem:[#allocation2 + $0x2b8] sm:$0xff]  ;;  %v428_v8 = vunpack.c.h.s8.bf16 %v156_v1  ;;  %v196_v1 = vld [vmem:[#allocation2 + $0x3a0] sm:$0xff] }
  0xfc   :  { %922 = vmatprep.subr.bf16.mxu0 %v357_v9  ;;  %1045 = vmatprep.subr.bf16.mxu1 %v359_v10  ;;  %v430_v9 = vunpack.c.h.s8.bf16 %v158_v2  ;;  %v437_v10 = vunpack.c.l.s8.bf16 %v165_v6  ;;  %v439_v12 = vunpack.c.l.s8.bf16 %v167_v7  ;;  %v198_v2 = vld [vmem:[#allocation2 + $0x3b0] sm:$0xff] }
  0xff   :  { %923 = vmatpush1.bf16.msra.mxu0 %v356_v14  ;;  %1046 = vmatpush1.bf16.msra.mxu1 %v358_v15  ;;  %v436_v14 = vunpack.c.l.s8.bf16 %v164_v13 }
 0x100   :  { %924 = vmatprep.subr.bf16.mxu0 %v365_v16  ;;  %1047 = vmatprep.subr.bf16.mxu1 %v367_v17  ;;  %v445_v16 = vunpack.c.h.s8.bf16 %v165_v6  ;;  %v447_v17 = vunpack.c.h.s8.bf16 %v167_v7  ;;  %v205_v6 = vld [vmem:[#allocation2 + $0x3e8] sm:$0xff]  ;;  %v207_v7 = vld [vmem:[#allocation2 + $0x3f8] sm:$0xff] }
 0x103   :  { %925 = vmatpush1.bf16.msra.mxu0 %v364_v22  ;;  %1048 = vmatpush1.bf16.msra.mxu1 %v366_v20  ;;  %v444_v22 = vunpack.c.h.s8.bf16 %v164_v13  ;;  %v204_v13 = vld [vmem:[#allocation2 + $0x3e0] sm:$0xff] }
 0x104   :  { %926 = vmatprep.subr.bf16.mxu0 %v373_v21  ;;  %1049 = vmatprep.subr.bf16.mxu1 %v375_v23  ;;  %v453_v21 = vunpack.c.l.s8.bf16 %v173_v18  ;;  %v455_v23 = vunpack.c.l.s8.bf16 %v175_v19 }
 0x107   :  { %927 = vmatpush1.bf16.msra.mxu0 %v372_v27  ;;  %1050 = vmatpush1.bf16.msra.mxu1 %v374_v28  ;;  %v452_v27 = vunpack.c.l.s8.bf16 %v172_v24  ;;  %v454_v28 = vunpack.c.l.s8.bf16 %v174_v25 }
 0x108   :  { %928 = vmatprep.subr.bf16.mxu0 %v381_v29  ;;  %1051 = vmatprep.subr.bf16.mxu1 %v383_v30  ;;  %v461_v29 = vunpack.c.h.s8.bf16 %v173_v18  ;;  %v463_v30 = vunpack.c.h.s8.bf16 %v175_v19  ;;  %v213_v18 = vld [vmem:[#allocation2 + $0x428] sm:$0xff]  ;;  %v215_v19 = vld [vmem:[#allocation2 + $0x438] sm:$0xff] }
 0x10b   :  { %929 = vmatpush1.bf16.msra.mxu0 %v380_v34  ;;  %1052 = vmatpush1.bf16.msra.mxu1 %v382_v37  ;;  %v460_v34 = vunpack.c.h.s8.bf16 %v172_v24  ;;  %v462_v37 = vunpack.c.h.s8.bf16 %v174_v25  ;;  %v212_v24 = vld [vmem:[#allocation2 + $0x420] sm:$0xff]  ;;  %v214_v25 = vld [vmem:[#allocation2 + $0x430] sm:$0xff] }
 0x10c   :  { %930 = vmatprep.subr.bf16.mxu0 %v389_v38  ;;  %1053 = vmatprep.subr.bf16.mxu1 %v391_v51  ;;  %v469_v38 = vunpack.c.l.s8.bf16 %v181_v32  ;;  %v471_v51 = vunpack.c.l.s8.bf16 %v183_v33 }
 0x10f   :  { %931 = vmatpush1.bf16.msra.mxu0 %v388_v42  ;;  %1054 = vmatpush1.bf16.msra.mxu1 %v390_v43  ;;  %v468_v42 = vunpack.c.l.s8.bf16 %v180_v39  ;;  %v470_v43 = vunpack.c.l.s8.bf16 %v182_v47 }
 0x110   :  { %932 = vmatprep.subr.bf16.mxu0 %v397_v44  ;;  %1055 = vmatprep.subr.bf16.mxu1 %v399_v45  ;;  %v477_v44 = vunpack.c.h.s8.bf16 %v181_v32  ;;  %v479_v45 = vunpack.c.h.s8.bf16 %v183_v33  ;;  %v221_v32 = vld [vmem:[#allocation2 + $0x468] sm:$0xff]  ;;  %v223_v33 = vld [vmem:[#allocation2 + $0x478] sm:$0xff] }
 0x113   :  { %933 = vmatpush1.bf16.msra.mxu0 %v396_v49  ;;  %1056 = vmatpush1.bf16.msra.mxu1 %v398_v36  ;;  %v476_v49 = vunpack.c.h.s8.bf16 %v180_v39  ;;  %v478_v36 = vunpack.c.h.s8.bf16 %v182_v47  ;;  %v220_v39 = vld [vmem:[#allocation2 + $0x460] sm:$0xff]  ;;  %v222_v47 = vld [vmem:[#allocation2 + $0x470] sm:$0xff] }
 0x114   :  { %943 = vmatprep.subr.bf16.mxu0 %v405_v50  ;;  %1066 = vmatprep.subr.bf16.mxu1 %v407_v52  ;;  %v485_v50 = vunpack.c.l.s8.bf16 %v189_v46  ;;  %v487_v52 = vunpack.c.l.s8.bf16 %v191_v48 }
 0x116   :  { %935 = vmatmul.mubr.bf16.vlgmr.msra.gmra.mrb[4].mxu0 %v2881_v55  ;;  %1058 = vmatmul.mubr.bf16.vlgmr.msra.gmra.mrb[4].mxu1 %v2881_v55  ;;  %v429_v55 = vunpack.c.h.s8.bf16 %v157_v59  ;;  %v197_v59 = vld [vmem:[#allocation2 + $0x3a8] sm:$0xff] }
 0x117   :  { %944 = vmatpush1.bf16.msra.mxu0 %v404_v35  ;;  %1067 = vmatpush1.bf16.msra.mxu1 %v406_v56  ;;  %v484_v35 = vunpack.c.l.s8.bf16 %v188_v53  ;;  %v486_v56 = vunpack.c.l.s8.bf16 %v190_v54 }
 0x118   :  { %945 = vmatprep.subr.bf16.mxu0 %v413_v57  ;;  %1068 = vmatprep.subr.bf16.mxu1 %v415_v58  ;;  %v493_v57 = vunpack.c.h.s8.bf16 %v189_v46  ;;  %v495_v58 = vunpack.c.h.s8.bf16 %v191_v48  ;;  %v231_v46 = vld [vmem:[#allocation2 + $0x4b8] sm:$0xff]  ;;  %v556_v48 = vunpack.c.h.s8.bf16 %v220_v39 }
 0x119   :  { %975 = vmatprep.mubr.bf16.mxu0 %v2883_v61  ;;  %1098 = vmatprep.mubr.bf16.mxu1 %v2883_v61  ;;  %v166_v61 = vld [vmem:[#allocation2 + $0x2b0] sm:$0xff] }
 0x11a   :  { %v438_v15 = vunpack.c.l.s8.bf16 %v166_v61  ;;  %v446_v20 = vunpack.c.h.s8.bf16 %v166_v61  ;;  %v206_v61 = vld [vmem:[#allocation2 + $0x3f0] sm:$0xff] }
 0x11b   :  { %946 = vmatpush1.bf16.msra.mxu0 %v412_v62  ;;  %1069 = vmatpush1.bf16.msra.mxu1 %v414_v63  ;;  %v492_v62 = vunpack.c.h.s8.bf16 %v188_v53  ;;  %v494_v63 = vunpack.c.h.s8.bf16 %v190_v54 }
 0x11c   :  { %947 = vmatprep.subr.bf16.mxu0 %v421_v41  ;;  %1070 = vmatprep.subr.bf16.mxu1 %v423_v0  ;;  %v501_v41 = vunpack.c.l.s8.bf16 %v197_v59  ;;  %v503_v0 = vunpack.c.l.s8.bf16 %v199_v60 }
 0x11f   :  { %948 = vmatpush1.bf16.msra.mxu0 %v420_v3  ;;  %1071 = vmatpush1.bf16.msra.mxu1 %v422_v4  ;;  %v500_v3 = vunpack.c.l.s8.bf16 %v196_v1  ;;  %v502_v4 = vunpack.c.l.s8.bf16 %v198_v2 }
 0x120   :  { %949 = vmatprep.subr.bf16.mxu0 %v429_v55  ;;  %1072 = vmatprep.subr.bf16.mxu1 %v431_v5  ;;  %v509_v55 = vunpack.c.h.s8.bf16 %v197_v59  ;;  %v511_v5 = vunpack.c.h.s8.bf16 %v199_v60 }
 0x123   :  { %950 = vmatpush1.bf16.msra.mxu0 %v428_v8  ;;  %1073 = vmatpush1.bf16.msra.mxu1 %v430_v9  ;;  %v508_v8 = vunpack.c.h.s8.bf16 %v196_v1  ;;  %v510_v9 = vunpack.c.h.s8.bf16 %v198_v2 }
 0x124   :  { %951 = vmatprep.subr.bf16.mxu0 %v437_v10  ;;  %1074 = vmatprep.subr.bf16.mxu1 %v439_v12  ;;  %v517_v10 = vunpack.c.l.s8.bf16 %v205_v6  ;;  %v519_v12 = vunpack.c.l.s8.bf16 %v207_v7 }
 0x127   :  { %952 = vmatpush1.bf16.msra.mxu0 %v436_v14  ;;  %1075 = vmatpush1.bf16.msra.mxu1 %v438_v15  ;;  %v516_v14 = vunpack.c.l.s8.bf16 %v204_v13  ;;  %v518_v15 = vunpack.c.l.s8.bf16 %v206_v61 }
 0x128   :  { %953 = vmatprep.subr.bf16.mxu0 %v445_v16  ;;  %1076 = vmatprep.subr.bf16.mxu1 %v447_v17  ;;  %v525_v16 = vunpack.c.h.s8.bf16 %v205_v6  ;;  %v527_v17 = vunpack.c.h.s8.bf16 %v207_v7 }
 0x12b   :  { %954 = vmatpush1.bf16.msra.mxu0 %v444_v22  ;;  %1077 = vmatpush1.bf16.msra.mxu1 %v446_v20  ;;  %v524_v22 = vunpack.c.h.s8.bf16 %v204_v13  ;;  %v526_v20 = vunpack.c.h.s8.bf16 %v206_v61 }
 0x12c   :  { %955 = vmatprep.subr.bf16.mxu0 %v453_v21  ;;  %1078 = vmatprep.subr.bf16.mxu1 %v455_v23  ;;  %v533_v21 = vunpack.c.l.s8.bf16 %v213_v18  ;;  %v535_v23 = vunpack.c.l.s8.bf16 %v215_v19 }
 0x12f   :  { %956 = vmatpush1.bf16.msra.mxu0 %v452_v27  ;;  %1079 = vmatpush1.bf16.msra.mxu1 %v454_v28  ;;  %v532_v27 = vunpack.c.l.s8.bf16 %v212_v24  ;;  %v534_v28 = vunpack.c.l.s8.bf16 %v214_v25 }
 0x130   :  { %957 = vmatprep.subr.bf16.mxu0 %v461_v29  ;;  %1080 = vmatprep.subr.bf16.mxu1 %v463_v30  ;;  %v541_v29 = vunpack.c.h.s8.bf16 %v213_v18  ;;  %v543_v30 = vunpack.c.h.s8.bf16 %v215_v19 }
 0x133   :  { %958 = vmatpush1.bf16.msra.mxu0 %v460_v34  ;;  %1081 = vmatpush1.bf16.msra.mxu1 %v462_v37  ;;  %v540_v34 = vunpack.c.h.s8.bf16 %v212_v24  ;;  %v542_v37 = vunpack.c.h.s8.bf16 %v214_v25 }
 0x134   :  { %959 = vmatprep.subr.bf16.mxu0 %v469_v38  ;;  %1082 = vmatprep.subr.bf16.mxu1 %v471_v51  ;;  %v549_v38 = vunpack.c.l.s8.bf16 %v221_v32  ;;  %v551_v51 = vunpack.c.l.s8.bf16 %v223_v33 }
 0x137   :  { %960 = vmatpush1.bf16.msra.mxu0 %v468_v42  ;;  %1083 = vmatpush1.bf16.msra.mxu1 %v470_v43  ;;  %v548_v42 = vunpack.c.l.s8.bf16 %v220_v39  ;;  %v550_v43 = vunpack.c.l.s8.bf16 %v222_v47 }
 0x138   :  { %961 = vmatprep.subr.bf16.mxu0 %v477_v44  ;;  %1084 = vmatprep.subr.bf16.mxu1 %v479_v45  ;;  %v559_v44 = vunpack.c.h.s8.bf16 %v223_v33  ;;  %v229_v45 = vld [vmem:[#allocation2 + $0x4a8] sm:$0xff] }
 0x13b   :  { %962 = vmatpush1.bf16.msra.mxu0 %v476_v49  ;;  %1085 = vmatpush1.bf16.msra.mxu1 %v478_v36  ;;  %v558_v49 = vunpack.c.h.s8.bf16 %v222_v47  ;;  %v565_v36 = vunpack.c.l.s8.bf16 %v229_v45 }
 0x13c   :  { %963 = vmatprep.subr.bf16.mxu0 %v485_v50  ;;  %1086 = vmatprep.subr.bf16.mxu1 %v487_v52  ;;  %v567_v50 = vunpack.c.l.s8.bf16 %v231_v46  ;;  %v228_v52 = vld [vmem:[#allocation2 + $0x4a0] sm:$0xff] }
 0x13d   :  { %v564_v53 = vunpack.c.l.s8.bf16 %v228_v52  ;;  %v572_v59 = vunpack.c.h.s8.bf16 %v228_v52 }
 0x13f   :  { %964 = vmatpush1.bf16.msra.mxu0 %v484_v35  ;;  %1087 = vmatpush1.bf16.msra.mxu1 %v486_v56  ;;  %v573_v35 = vunpack.c.h.s8.bf16 %v229_v45  ;;  %v575_v56 = vunpack.c.h.s8.bf16 %v231_v46 }
 0x140   :  { %965 = vmatprep.subr.bf16.mxu0 %v493_v57  ;;  %1088 = vmatprep.subr.bf16.mxu1 %v495_v58  ;;  %v237_v57 = vld [vmem:[#allocation2 + $0x4e8] sm:$0xff]  ;;  %v239_v58 = vld [vmem:[#allocation2 + $0x4f8] sm:$0xff] }
 0x143   :  { %966 = vmatpush1.bf16.msra.mxu0 %v492_v62  ;;  %1089 = vmatpush1.bf16.msra.mxu1 %v494_v63  ;;  %v581_v62 = vunpack.c.l.s8.bf16 %v237_v57  ;;  %v583_v63 = vunpack.c.l.s8.bf16 %v239_v58 }
 0x144   :  { %967 = vmatprep.subr.bf16.mxu0 %v501_v41  ;;  %1090 = vmatprep.subr.bf16.mxu1 %v503_v0  ;;  %v236_v41 = vld [vmem:[#allocation2 + $0x4e0] sm:$0xff]  ;;  %v238_v0 = vld [vmem:[#allocation2 + $0x4f0] sm:$0xff] }
 0x145   :  { %v580_v1 = vunpack.c.l.s8.bf16 %v236_v41  ;;  %v582_v2 = vunpack.c.l.s8.bf16 %v238_v0  ;;  %v588_v6 = vunpack.c.h.s8.bf16 %v236_v41  ;;  %v590_v7 = vunpack.c.h.s8.bf16 %v238_v0  ;;  %v2656_v41 = vld [vmem:[%s3279_s3 + $0x8] sm:$0xff]  }
 0x146   :  { %v2657_v0 = vld [vmem:[%s3279_s3 + $0x88] sm:$0xff]  }
 0x147   :  { %968 = vmatpush1.bf16.msra.mxu0 %v500_v3  ;;  %1091 = vmatpush1.bf16.msra.mxu1 %v502_v4  ;;  %v589_v3 = vunpack.c.h.s8.bf16 %v237_v57  ;;  %v591_v4 = vunpack.c.h.s8.bf16 %v239_v58  ;;  %v2650_v57 = vld [vmem:[%s3279_s3 + $0x40] sm:$0xff]  }
 0x148   :  { %969 = vmatprep.subr.bf16.mxu0 %v509_v55  ;;  %1092 = vmatprep.subr.bf16.mxu1 %v511_v5  ;;  %v245_v55 = vld [vmem:[#allocation2 + $0x528] sm:$0xff]  ;;  %v247_v5 = vld [vmem:[#allocation2 + $0x538] sm:$0xff]  ;;  %v2651_v58 = vld [vmem:[%s3279_s3 + $0xc0] sm:$0xff]  }
 0x14b   :  { %970 = vmatpush1.bf16.msra.mxu0 %v508_v8  ;;  %1093 = vmatpush1.bf16.msra.mxu1 %v510_v9  ;;  %v597_v8 = vunpack.c.l.s8.bf16 %v245_v55  ;;  %v599_v9 = vunpack.c.l.s8.bf16 %v247_v5 }
 0x14c   :  { %971 = vmatprep.subr.bf16.mxu0 %v517_v10  ;;  %1094 = vmatprep.subr.bf16.mxu1 %v519_v12  ;;  %v244_v10 = vld [vmem:[#allocation2 + $0x520] sm:$0xff]  ;;  %v246_v12 = vld [vmem:[#allocation2 + $0x530] sm:$0xff] }
 0x14d   :  { %v596_v13 = vunpack.c.l.s8.bf16 %v244_v10  ;;  %v598_v61 = vunpack.c.l.s8.bf16 %v246_v12  ;;  %v604_v18 = vunpack.c.h.s8.bf16 %v244_v10  ;;  %v606_v19 = vunpack.c.h.s8.bf16 %v246_v12  ;;  %v2669_v10 = vld [vmem:[%s3279_s3 + $0xa0] sm:$0xff]  }
 0x14e   :  { %v1156_v12 = vsub.s32 1, %v2852_v26 }
 0x14f   :  { %972 = vmatpush1.bf16.msra.mxu0 %v516_v14  ;;  %1095 = vmatpush1.bf16.msra.mxu1 %v518_v15  ;;  %v605_v14 = vunpack.c.h.s8.bf16 %v245_v55  ;;  %v607_v15 = vunpack.c.h.s8.bf16 %v247_v5  ;;  %v2663_v55 = vld [vmem:[%s3279_s3 + $0xd8] sm:$0xff]  }
 0x150   :  { %973 = vmatprep.subr.bf16.mxu0 %v525_v16  ;;  %1096 = vmatprep.subr.bf16.mxu1 %v527_v17  ;;  %v253_v16 = vld [vmem:[#allocation2 + $0x568] sm:$0xff]  ;;  %v255_v17 = vld [vmem:[#allocation2 + $0x578] sm:$0xff] }
 0x151   :  { %v2664_v5 = vld [vmem:[%s3279_s3 + $0x18] sm:$0xff]  }
 0x153   :  { %974 = vmatpush1.bf16.msra.mxu0 %v524_v22  ;;  %1097 = vmatpush1.bf16.msra.mxu1 %v526_v20  ;;  %v613_v22 = vunpack.c.l.s8.bf16 %v253_v16  ;;  %v615_v20 = vunpack.c.l.s8.bf16 %v255_v17 }
 0x154   :  { %984 = vmatprep.subr.bf16.mxu0 %v533_v21  ;;  %1107 = vmatprep.subr.bf16.mxu1 %v535_v23  ;;  %v252_v21 = vld [vmem:[#allocation2 + $0x560] sm:$0xff]  ;;  %v254_v23 = vld [vmem:[#allocation2 + $0x570] sm:$0xff] }
 0x155   :  { %v612_v24 = vunpack.c.l.s8.bf16 %v252_v21  ;;  %v614_v25 = vunpack.c.l.s8.bf16 %v254_v23  ;;  %v622_v33 = vunpack.c.h.s8.bf16 %v254_v23 }
 0x156   :  { %976 = vmatmul.mubr.bf16.vlgmr.msra.gmra.mrb[4].mxu0 %v2898_v31  ;;  %1099 = vmatmul.mubr.bf16.vlgmr.msra.gmra.mrb[4].mxu1 %v2898_v31  ;;  %v557_v31 = vunpack.c.h.s8.bf16 %v221_v32  ;;  %v620_v32 = vunpack.c.h.s8.bf16 %v252_v21  ;;  %v2673_v21 = vld [vmem:[%s3279_s3 + $0xa8] sm:$0xff]  }
 0x157   :  { %985 = vmatpush1.bf16.msra.mxu0 %v532_v27  ;;  %1108 = vmatpush1.bf16.msra.mxu1 %v534_v28  ;;  %v621_v27 = vunpack.c.h.s8.bf16 %v253_v16  ;;  %v623_v28 = vunpack.c.h.s8.bf16 %v255_v17  ;;  %v2670_v16 = vld [vmem:[%s3279_s3 + $0x68] sm:$0xff]  }
 0x158   :  { %986 = vmatprep.subr.bf16.mxu0 %v541_v29  ;;  %1109 = vmatprep.subr.bf16.mxu1 %v543_v30  ;;  %v261_v29 = vld [vmem:[#allocation2 + $0x5a8] sm:$0xff]  ;;  %v263_v30 = vld [vmem:[#allocation2 + $0x5b8] sm:$0xff] }
 0x159   :  { %1016 = vmatprep.mubr.bf16.mxu0 %v2900_v40  ;;  %1139 = vmatprep.mubr.bf16.mxu1 %v2900_v40  ;;  %v230_v40 = vld [vmem:[#allocation2 + $0x4b0] sm:$0xff]  ;;  %v2671_v17 = vld [vmem:[%s3279_s3 + $0xe8] sm:$0xff]  }
 0x15a   :  { %v566_v54 = vunpack.c.l.s8.bf16 %v230_v40  ;;  %v574_v60 = vunpack.c.h.s8.bf16 %v230_v40 }
 0x15b   :  { %987 = vmatpush1.bf16.msra.mxu0 %v540_v34  ;;  %1110 = vmatpush1.bf16.msra.mxu1 %v542_v37  ;;  %v629_v34 = vunpack.c.l.s8.bf16 %v261_v29  ;;  %v631_v37 = vunpack.c.l.s8.bf16 %v263_v30 }
 0x15c   :  { %988 = vmatprep.subr.bf16.mxu0 %v549_v38  ;;  %1111 = vmatprep.subr.bf16.mxu1 %v551_v51  ;;  %v260_v38 = vld [vmem:[#allocation2 + $0x5a0] sm:$0xff]  ;;  %v262_v51 = vld [vmem:[#allocation2 + $0x5b0] sm:$0xff] }
 0x15d   :  { %v628_v39 = vunpack.c.l.s8.bf16 %v260_v38  ;;  %v630_v47 = vunpack.c.l.s8.bf16 %v262_v51  ;;  %v636_v45 = vunpack.c.h.s8.bf16 %v260_v38  ;;  %v638_v46 = vunpack.c.h.s8.bf16 %v262_v51 }
 0x15f   :  { %989 = vmatpush1.bf16.msra.mxu0 %v548_v42  ;;  %1112 = vmatpush1.bf16.msra.mxu1 %v550_v43  ;;  %v637_v42 = vunpack.c.h.s8.bf16 %v261_v29  ;;  %v639_v43 = vunpack.c.h.s8.bf16 %v263_v30 }
 0x160   :  { %990 = vmatprep.subr.bf16.mxu0 %v557_v31  ;;  %1113 = vmatprep.subr.bf16.mxu1 %v559_v44  ;;  %v269_v31 = vld [vmem:[#allocation2 + $0x5e8] sm:$0xff]  ;;  %v271_v44 = vld [vmem:[#allocation2 + $0x5f8] sm:$0xff] }
 0x163   :  { %991 = vmatpush1.bf16.msra.mxu0 %v556_v48  ;;  %1114 = vmatpush1.bf16.msra.mxu1 %v558_v49  ;;  %v645_v48 = vunpack.c.l.s8.bf16 %v269_v31  ;;  %v647_v49 = vunpack.c.l.s8.bf16 %v271_v44 }
 0x164   :  { %992 = vmatprep.subr.bf16.mxu0 %v565_v36  ;;  %1115 = vmatprep.subr.bf16.mxu1 %v567_v50  ;;  %v268_v36 = vld [vmem:[#allocation2 + $0x5e0] sm:$0xff]  ;;  %v270_v50 = vld [vmem:[#allocation2 + $0x5f0] sm:$0xff] }
 0x165   :  { %v644_v52 = vunpack.c.l.s8.bf16 %v268_v36  ;;  %v646_v40 = vunpack.c.l.s8.bf16 %v270_v50 }
 0x167   :  { %993 = vmatpush1.bf16.msra.mxu0 %v564_v53  ;;  %1116 = vmatpush1.bf16.msra.mxu1 %v566_v54  ;;  %v653_v53 = vunpack.c.h.s8.bf16 %v269_v31  ;;  %v655_v54 = vunpack.c.h.s8.bf16 %v271_v44 }
 0x168   :  { %994 = vmatprep.subr.bf16.mxu0 %v573_v35  ;;  %1117 = vmatprep.subr.bf16.mxu1 %v575_v56  ;;  %v652_v35 = vunpack.c.h.s8.bf16 %v268_v36  ;;  %v654_v56 = vunpack.c.h.s8.bf16 %v270_v50  ;;  %v2679_v36 = vld [vmem:[%s3279_s3 + $0xf8] sm:$0xff]  }
 0x16b   :  { %995 = vmatpush1.bf16.msra.mxu0 %v572_v59  ;;  %1118 = vmatpush1.bf16.msra.mxu1 %v574_v60  ;;  %v2652_v59 = vld [vmem:[%s3279_s3] sm:$0xff]  }
 0x16c   :  { %996 = vmatprep.subr.bf16.mxu0 %v581_v62  ;;  %1119 = vmatprep.subr.bf16.mxu1 %v583_v63  ;;  %v2653_v60 = vld [vmem:[%s3279_s3 + $0x80] sm:$0xff]   ;;  %v2654_v62 = vld [vmem:[%s3279_s3 + $0x48] sm:$0xff]  }
 0x16d   :  { %v2655_v63 = vld [vmem:[%s3279_s3 + $0xc8] sm:$0xff]  }
 0x16f   :  { %997 = vmatpush1.bf16.msra.mxu0 %v580_v1  ;;  %1120 = vmatpush1.bf16.msra.mxu1 %v582_v2  ;;  %v2658_v1 = vld [vmem:[%s3279_s3 + $0x50] sm:$0xff]  }
 0x170   :  { %998 = vmatprep.subr.bf16.mxu0 %v589_v3  ;;  %1121 = vmatprep.subr.bf16.mxu1 %v591_v4  ;;  %v2660_v2 = vld [vmem:[%s3279_s3 + $0x10] sm:$0xff]   ;;  %v2662_v4 = vld [vmem:[%s3279_s3 + $0x58] sm:$0xff]  }
 0x171   :  { %v2661_v3 = vld [vmem:[%s3279_s3 + $0x90] sm:$0xff]  }
 0x173   :  { %999 = vmatpush1.bf16.msra.mxu0 %v588_v6  ;;  %1122 = vmatpush1.bf16.msra.mxu1 %v590_v7  ;;  %v2665_v6 = vld [vmem:[%s3279_s3 + $0x98] sm:$0xff]   ;;  %v2666_v7 = vld [vmem:[%s3279_s3 + $0x60] sm:$0xff]  }
 0x174   :  { %1000 = vmatprep.subr.bf16.mxu0 %v597_v8  ;;  %1123 = vmatprep.subr.bf16.mxu1 %v599_v9  ;;  %v2667_v8 = vld [vmem:[%s3279_s3 + $0xe0] sm:$0xff]  }
 0x175   :  { %v2668_v9 = vld [vmem:[%s3279_s3 + $0x20] sm:$0xff]  }
 0x177   :  { %1001 = vmatpush1.bf16.msra.mxu0 %v596_v13  ;;  %1124 = vmatpush1.bf16.msra.mxu1 %v598_v61  ;;  %v1164_v13 = vsub.s32 3, %v2852_v26  ;;  %v2989_v61 = vld [vmem:[%s3278_s2] ss:$2 sm:$0xff] }
 0x178   :  { %1002 = vmatprep.subr.bf16.mxu0 %v605_v14  ;;  %1125 = vmatprep.subr.bf16.mxu1 %v607_v15  ;;  %v1152_v14 = vsub.s32 0, %v2852_v26  ;;  %v1160_v15 = vsub.s32 2, %v2852_v26 }
 0x17a   :  { %v1153_v23 = vrot.slane %v2989_v61, %v1152_v14 }
 0x17b   :  { %1003 = vmatpush1.bf16.msra.mxu0 %v604_v18  ;;  %1126 = vmatpush1.bf16.msra.mxu1 %v606_v19  ;;  %v3002_v18 = vld [vmem:[%s3278_s2 + $0x1] ss:$2 sm:$0xff]  ;;  %v1157_v19 = vrot.slane %v2989_v61, %v1156_v12 }
 0x17c   :  { %1004 = vmatprep.subr.bf16.mxu0 %v613_v22  ;;  %1127 = vmatprep.subr.bf16.mxu1 %v615_v20  ;;  %v1165_v22 = vrot.slane %v2989_v61, %v1164_v13  ;;  %v2672_v20 = vld [vmem:[%s3279_s3 + $0x28] sm:$0xff]   ;;  %v1208_v30 = vrot.slane %v3002_v18, %v1156_v12  ;;  %v2699_v12 = vld [vmem:[%s3279_s3 + $0x1e0] sm:$0xff]  }
 0x17f   :  { %1005 = vmatpush1.bf16.msra.mxu0 %v612_v24  ;;  %1128 = vmatpush1.bf16.msra.mxu1 %v614_v25  ;;  %v1161_v24 = vrot.slane %v2989_v61, %v1160_v15  ;;  %v2674_v25 = vld [vmem:[%s3279_s3 + $0x70] sm:$0xff]  }
 0x180   :  { %1006 = vmatprep.subr.bf16.mxu0 %v621_v27  ;;  %1129 = vmatprep.subr.bf16.mxu1 %v623_v28  ;;  %v2675_v27 = vld [vmem:[%s3279_s3 + $0xf0] sm:$0xff]  }
 0x183   :  { %1007 = vmatpush1.bf16.msra.mxu0 %v620_v32  ;;  %1130 = vmatpush1.bf16.msra.mxu1 %v622_v33  ;;  %v1216_v32 = vrot.slane %v3002_v18, %v1164_v13  ;;  %v2700_v13 = vld [vmem:[%s3279_s3 + $0x120] sm:$0xff]  }
 0x184   :  { %1008 = vmatprep.subr.bf16.mxu0 %v629_v34  ;;  %1131 = vmatprep.subr.bf16.mxu1 %v631_v37  ;;  %v1204_v37 = vrot.slane %v3002_v18, %v1152_v14  ;;  %v2701_v14 = vld [vmem:[%s3279_s3 + $0x1a0] sm:$0xff]  }
 0x187   :  { %1009 = vmatpush1.bf16.msra.mxu0 %v628_v39  ;;  %1132 = vmatpush1.bf16.msra.mxu1 %v630_v47 }
 0x188   :  { %1010 = vmatprep.subr.bf16.mxu0 %v637_v42  ;;  %1133 = vmatprep.subr.bf16.mxu1 %v639_v43  ;;  %v2676_v42 = vld [vmem:[%s3279_s3 + $0x30] sm:$0xff]  }
 0x189   :  { %v2677_v43 = vld [vmem:[%s3279_s3 + $0xb0] sm:$0xff]  }
 0x18b   :  { %1011 = vmatpush1.bf16.msra.mxu0 %v636_v45  ;;  %1134 = vmatpush1.bf16.msra.mxu1 %v638_v46  ;;  %v1212_v45 = vrot.slane %v3002_v18, %v1160_v15  ;;  %v2702_v15 = vld [vmem:[%s3279_s3 + $0x168] sm:$0xff]  }
 0x18c   :  { %1012 = vmatprep.subr.bf16.mxu0 %v645_v48  ;;  %1135 = vmatprep.subr.bf16.mxu1 %v647_v49  ;;  %v2678_v49 = vld [vmem:[%s3279_s3 + $0x78] sm:$0xff]  }
 0x18f   :  { %1013 = vmatpush1.bf16.msra.mxu0 %v644_v52  ;;  %1136 = vmatpush1.bf16.msra.mxu1 %v646_v40 }
 0x190   :  { %1014 = vmatprep.subr.bf16.mxu0 %v653_v53  ;;  %1137 = vmatprep.subr.bf16.mxu1 %v655_v54  ;;  %v2680_v54 = vld [vmem:[%s3279_s3 + $0x38] sm:$0xff]  }
 0x193   :  { %1015 = vmatpush1.bf16.msra.mxu0 %v652_v35  ;;  %1138 = vmatpush1.bf16.msra.mxu1 %v654_v56  ;;  %v2681_v35 = vld [vmem:[%s3279_s3 + $0xb8] sm:$0xff]  }
 0x194   :  { %2435 = vmatprep.subr.bf16.mxu0 %v2650_v57  ;;  %2457 = vmatprep.subr.bf16.mxu1 %v2651_v58  ;;  %v2682_v58 = vld [vmem:[%s3279_s3 + $0x140] sm:$0xff]  }
 0x196   :  { %1017 = vmatmul.mubr.bf16.vlgmr.msra.gmra.mrb[4].mxu0 %v2908_v11  ;;  %1140 = vmatmul.mubr.bf16.vlgmr.msra.gmra.mrb[4].mxu1 %v2908_v11  ;;  %v2659_v11 = vld [vmem:[%s3279_s3 + $0xd0] sm:$0xff]  }
 0x197   :  { %2436 = vmatpush3.bf16.msra.mxu0 %v2652_v59  ;;  %2458 = vmatpush3.bf16.msra.mxu1 %v2653_v60  ;;  %v2683_v59 = vld [vmem:[%s3279_s3 + $0x1c0] sm:$0xff]  }
 0x198   :  { %2437 = vmatprep.subr.bf16.mxu0 %v2654_v62  ;;  %2459 = vmatprep.subr.bf16.mxu1 %v2655_v63  ;;  %v2684_v60 = vld [vmem:[%s3279_s3 + $0x100] sm:$0xff]  }
 0x199   :  { %v2685_v62 = vld [vmem:[%s3279_s3 + $0x180] sm:$0xff]  }
 0x19b   :  { %2438 = vmatpush3.bf16.msra.mxu0 %v2656_v41  ;;  %2460 = vmatpush3.bf16.msra.mxu1 %v2657_v0  ;;  %v2686_v0 = vld [vmem:[%s3279_s3 + $0x148] sm:$0xff]  }
 0x19c   :  { %2439 = vmatprep.subr.bf16.mxu0 %v2658_v1  ;;  %2461 = vmatprep.subr.bf16.mxu1 %v2659_v11  ;;  %v2687_v1 = vld [vmem:[%s3279_s3 + $0x1c8] sm:$0xff]  }
 0x19d   :  { %v2688_v11 = vld [vmem:[%s3279_s3 + $0x108] sm:$0xff]  }
 0x19f   :  { %2440 = vmatpush3.bf16.msra.mxu0 %v2660_v2  ;;  %2462 = vmatpush3.bf16.msra.mxu1 %v2661_v3  ;;  %v2689_v2 = vld [vmem:[%s3279_s3 + $0x188] sm:$0xff]   ;;  %v2690_v3 = vld [vmem:[%s3279_s3 + $0x150] sm:$0xff]  }
 0x1a0   :  { %2441 = vmatprep.subr.bf16.mxu0 %v2662_v4  ;;  %2463 = vmatprep.subr.bf16.mxu1 %v2663_v55  ;;  %v2691_v4 = vld [vmem:[%s3279_s3 + $0x1d0] sm:$0xff]  }
 0x1a1   :  { %v2692_v55 = vld [vmem:[%s3279_s3 + $0x110] sm:$0xff]  }
 0x1a3   :  { %2442 = vmatpush3.bf16.msra.mxu0 %v2664_v5  ;;  %2464 = vmatpush3.bf16.msra.mxu1 %v2665_v6  ;;  %v2693_v5 = vld [vmem:[%s3279_s3 + $0x190] sm:$0xff]   ;;  %v2694_v6 = vld [vmem:[%s3279_s3 + $0x158] sm:$0xff]  }
 0x1a4   :  { %2443 = vmatprep.subr.bf16.mxu0 %v2666_v7  ;;  %2465 = vmatprep.subr.bf16.mxu1 %v2667_v8  ;;  %v2695_v7 = vld [vmem:[%s3279_s3 + $0x1d8] sm:$0xff]  }
 0x1a5   :  { %v2696_v8 = vld [vmem:[%s3279_s3 + $0x118] sm:$0xff]  }
 0x1a7   :  { %2444 = vmatpush3.bf16.msra.mxu0 %v2668_v9  ;;  %2466 = vmatpush3.bf16.msra.mxu1 %v2669_v10  ;;  %v2697_v9 = vld [vmem:[%s3279_s3 + $0x198] sm:$0xff]   ;;  %v2698_v10 = vld [vmem:[%s3279_s3 + $0x160] sm:$0xff]  }
 0x1a8   :  { %2445 = vmatprep.subr.bf16.mxu0 %v2670_v16  ;;  %2467 = vmatprep.subr.bf16.mxu1 %v2671_v17  ;;  %v2703_v16 = vld [vmem:[%s3279_s3 + $0x1e8] sm:$0xff]  }
 0x1a9   :  { %v772_v28 = vpop.f32.mrb[0].mxu0  ;;  %v895_v29 = vpop.f32.mrb[0].mxu1  ;;  %v2704_v17 = vld [vmem:[%s3279_s3 + $0x128] sm:$0xff]  }
 0x1aa   :  { %v774_v33 = vpop.f32.mrb[1].mxu0  ;;  %v897_v34 = vpop.f32.mrb[1].mxu1  ;;  %v1190_v31 = vmul.f32 %v1153_v23, %v772_v28  ;;  %v1192_v44 = vmul.f32 %v1161_v24, %v895_v29  ;;  %v2709_v23 = vld [vmem:[%s3279_s3 + $0x1b0] sm:$0xff]   ;;  %v2710_v24 = vld [vmem:[%s3279_s3 + $0x178] sm:$0xff]   ;;  %v1168_v29 = vsub.s32 4, %v2852_v26 }
 0x1ab   :  { %v1191_v38 = vmul.f32 %v1157_v19, %v774_v33  ;;  %v1193_v51 = vmul.f32 %v1165_v22, %v897_v34  ;;  %v776_v39 = vpop.f32.mrb[2].mxu0  ;;  %v899_v47 = vpop.f32.mrb[2].mxu1  ;;  %2446 = vmatpush3.bf16.msra.mxu0 %v2672_v20  ;;  %2468 = vmatpush3.bf16.msra.mxu1 %v2673_v21  ;;  %v2705_v19 = vld [vmem:[%s3279_s3 + $0x1a8] sm:$0xff]   ;;  %v2706_v22 = vld [vmem:[%s3279_s3 + $0x170] sm:$0xff]   ;;  %v2713_v28 = vld [vmem:[%s3279_s3 + $0x1b8] sm:$0xff]   ;;  %v1180_v33 = vsub.s32 7, %v2852_v26 }
 0x1ac   :  { %v777_v46 = vpop.f32.mrb[3].mxu0  ;;  %v900_v48 = vpop.f32.mrb[3].mxu1  ;;  %2447 = vmatprep.subr.bf16.mxu0 %v2674_v25  ;;  %2469 = vmatprep.subr.bf16.mxu1 %v2675_v27  ;;  %v1241_v56 = vadd.f32 %v1204_v37, %v1190_v31  ;;  %v1243_v57 = vadd.f32 %v1212_v45, %v1192_v44  ;;  %v2707_v20 = vld [vmem:[%s3279_s3 + $0x1f0] sm:$0xff]   ;;  %v2711_v25 = vld [vmem:[%s3279_s3 + $0x1f8] sm:$0xff]   ;;  %v1169_v34 = vrot.slane %v2989_v61, %v1168_v29 }
 0x1ad   :  { %v1242_v50 = vadd.f32 %v1208_v30, %v1191_v38  ;;  %v1244_v52 = vadd.f32 %v1216_v32, %v1193_v51  ;;  %v2708_v21 = vld [vmem:[%s3279_s3 + $0x130] sm:$0xff]   ;;  %v2712_v27 = vld [vmem:[%s3279_s3 + $0x138] sm:$0xff]   ;;  %v1176_v30 = vsub.s32 6, %v2852_v26  ;;  %v1172_v32 = vsub.s32 5, %v2852_v26  ;;  %s2297_s3 = sshll.u32 %s2804_s12, 4  ;;  %s2298_s3 = int_to_ptr.vmem [resolvable:$true] %s2297_s3 }
 0x1ae   :  { %v1249_v63 = vpack.c.bf16 %v1241_v56, %v1241_v56  ;;  %v1251_v41 = vpack.c.bf16 %v1243_v57, %v1243_v57  ;;  %v1181_v51 = vrot.slane %v2989_v61, %v1180_v33  ;;  %v1220_v39 = vrot.slane %v3002_v18, %v1168_v29  ;;  %s2772_s13 = scalar_lea.vmem %s2298_s3, 32  ;;  %p2777_p9 = scmp.lt.s32.totalorder %s2298_s3, %s2298_s3 }
 0x1af   :  { %v1250_v40 = vpack.c.bf16 %v1242_v50, %v1242_v50  ;;  %v1252_v53 = vpack.c.bf16 %v1244_v52, %v1244_v52  ;;  %2448 = vmatpush3.bf16.msra.mxu0 %v2676_v42  ;;  %2470 = vmatpush3.bf16.msra.mxu1 %v2677_v43  ;;  %v1177_v37 = vrot.slane %v2989_v61, %v1176_v30  ;;  %p2773_p8 = scmp.ne.s32.totalorder %s2298_s3, %s2772_s13  ;;  %p2778_p10 = scmp.lt.s32.totalorder %s2772_s13, %s2772_s13 }
 0x1b0   :  { %2449 = vmatprep.subr.bf16.mxu0 %v2678_v49  ;;  %2471 = vmatprep.subr.bf16.mxu1 %v2679_v36  ;;  %v1173_v38 = vrot.slane %v2989_v61, %v1172_v32  ;;  %v1228_v47 = vrot.slane %v3002_v18, %v1176_v30  ;;  %v1224_v31 = vrot.slane %v3002_v18, %v1172_v32 }
 0x1b1   :  { %1806 = vmatprep.mubr.bf16.mxu0 %v1250_v40  ;;  %1846 = vmatprep.mubr.bf16.mxu1 %v1252_v53  ;;  %v1232_v44 = vrot.slane %v3002_v18, %v1180_v33  ;;  %p2779_p11 = por %p2778_p10, %p2777_p9 }
 0x1b3   :  { %2450 = vmatpush3.bf16.msra.mxu0 %v2680_v54  ;;  %2472 = vmatpush3.bf16.msra.mxu1 %v2681_v35  ;;  %p2780_p12 = pnand %p2779_p11, %p2773_p8 }
 0x1b4   :  { %2479 = vmatprep.subr.bf16.mxu0 %v2682_v58  ;;  %2501 = vmatprep.subr.bf16.mxu1 %v2683_v59 }
 0x1b6   :  { %1807 = vmatmul.mubr.bf16.vlgmr.msra.gmra.mrb[8].mxu0 %v1249_v63  ;;  %1847 = vmatmul.mubr.bf16.vlgmr.msra.gmra.mrb[8].mxu1 %v1251_v41  ;;  %v2308_v63 = vld [vmem:[%s3281_s5] ss:$0 sm:$0xff] }
 0x1b7   :  { %2480 = vmatpush3.bf16.msra.mxu0 %v2684_v60  ;;  %2502 = vmatpush3.bf16.msra.mxu1 %v2685_v62 }
 0x1b8   :  { %2481 = vmatprep.subr.bf16.mxu0 %v2686_v0  ;;  %2503 = vmatprep.subr.bf16.mxu1 %v2687_v1 }
 0x1bb   :  { %2482 = vmatpush3.bf16.msra.mxu0 %v2688_v11  ;;  %2504 = vmatpush3.bf16.msra.mxu1 %v2689_v2 }
 0x1bc   :  { %2483 = vmatprep.subr.bf16.mxu0 %v2690_v3  ;;  %2505 = vmatprep.subr.bf16.mxu1 %v2691_v4 }
 0x1bf   :  { %2484 = vmatpush3.bf16.msra.mxu0 %v2692_v55  ;;  %2506 = vmatpush3.bf16.msra.mxu1 %v2693_v5 }
 0x1c0   :  { %2485 = vmatprep.subr.bf16.mxu0 %v2694_v6  ;;  %2507 = vmatprep.subr.bf16.mxu1 %v2695_v7  ;;  %v2714_v7 = vld [vmem:[%s3280_s4] sm:$0xff]  }
 0x1c3   :  { %2486 = vmatpush3.bf16.msra.mxu0 %v2696_v8  ;;  %2508 = vmatpush3.bf16.msra.mxu1 %v2697_v9  ;;  %v2802_v8 = vmov 0.0   ;;  %v2715_v9 = vld [vmem:[%s3280_s4 + $0x8] sm:$0xff]  }
 0x1c4   :  { %2487 = vmatprep.subr.bf16.mxu0 %v2698_v10  ;;  %2509 = vmatprep.subr.bf16.mxu1 %v2699_v12  ;;  %v2716_v10 = vld [vmem:[%s3280_s4 + $0x10] sm:$0xff]   ;;  %v2717_v12 = vld [vmem:[%s3280_s4 + $0x18] sm:$0xff]  }
 0x1c7   :  { %2488 = vmatpush3.bf16.msra.mxu0 %v2700_v13  ;;  %2510 = vmatpush3.bf16.msra.mxu1 %v2701_v14  ;;  %v2718_v13 = vld [vmem:[%s3280_s4 + $0x20] sm:$0xff]   ;;  %v2719_v14 = vld [vmem:[%s3280_s4 + $0x28] sm:$0xff]  }
 0x1c8   :  { %2489 = vmatprep.subr.bf16.mxu0 %v2702_v15  ;;  %2511 = vmatprep.subr.bf16.mxu1 %v2703_v16  ;;  %v2720_v15 = vld [vmem:[%s3280_s4 + $0x30] sm:$0xff]   ;;  %v2721_v16 = vld [vmem:[%s3280_s4 + $0x38] sm:$0xff]  }
 0x1cb   :  { %2490 = vmatpush3.bf16.msra.mxu0 %v2704_v17  ;;  %2512 = vmatpush3.bf16.msra.mxu1 %v2705_v19 }
 0x1cc   :  { %2491 = vmatprep.subr.bf16.mxu0 %v2706_v22  ;;  %2513 = vmatprep.subr.bf16.mxu1 %v2707_v20 }
 0x1cf   :  { %2492 = vmatpush3.bf16.msra.mxu0 %v2708_v21  ;;  %2514 = vmatpush3.bf16.msra.mxu1 %v2709_v23 }
 0x1d0   :  { %2493 = vmatprep.subr.bf16.mxu0 %v2710_v24  ;;  %2515 = vmatprep.subr.bf16.mxu1 %v2711_v25 }
 0x1d3   :  { %2494 = vmatpush3.bf16.msra.mxu0 %v2712_v27  ;;  %2516 = vmatpush3.bf16.msra.mxu1 %v2713_v28 }
 0x1d4   :  { %2550 = vmatprep.subr.bf16.mxu0 %v2802_v8  ;;  %2570 = vmatprep.subr.bf16.mxu1 %v2802_v8 }
 0x269   :  { %v1018_v42 = vpop.f32.mrb[4].mxu0  ;;  %v1141_v43 = vpop.f32.mrb[4].mxu1 }
 0x26a   :  { %v1194_v45 = vmul.f32 %v1169_v34, %v1018_v42  ;;  %v1196_v26 = vmul.f32 %v1177_v37, %v1141_v43  ;;  %v1020_v46 = vpop.f32.mrb[5].mxu0  ;;  %v1143_v48 = vpop.f32.mrb[5].mxu1  ;;  %v2723_v42 = vld [vmem:[%s3280_s4 + $0x48] sm:$0xff]   ;;  %v2724_v43 = vld [vmem:[%s3280_s4 + $0x50] sm:$0xff]  }
 0x26b   :  { %v1195_v49 = vmul.f32 %v1173_v38, %v1020_v46  ;;  %v1197_v36 = vmul.f32 %v1181_v51, %v1143_v48  ;;  %v1022_v50 = vpop.f32.mrb[6].mxu0  ;;  %v1145_v52 = vpop.f32.mrb[6].mxu1  ;;  %v2729_v46 = vld [vmem:[%s3280_s4 + $0x78] sm:$0xff]   ;;  %v2374_v48 = vld [vmem:[%s3281_s5 + $0x1] ss:$0 sm:$0xff] }
 0x26c   :  { %v1245_v40 = vadd.f32 %v1220_v39, %v1194_v45  ;;  %v1247_v61 = vadd.f32 %v1228_v47, %v1196_v26  ;;  %v1023_v53 = vpop.f32.mrb[7].mxu0  ;;  %v1146_v54 = vpop.f32.mrb[7].mxu1  ;;  %v2722_v47 = vld [vmem:[%s3280_s4 + $0x40] sm:$0xff]   ;;  %v2727_v45 = vld [vmem:[%s3280_s4 + $0x68] sm:$0xff]   ;;  %v2728_v26 = vld [vmem:[%s3280_s4 + $0x70] sm:$0xff]  }
 0x26d   :  { %v1246_v35 = vadd.f32 %v1224_v31, %v1195_v49  ;;  %v1248_v56 = vadd.f32 %v1232_v44, %v1197_v36  ;;  %v2725_v31 = vld [vmem:[%s3280_s4 + $0x58] sm:$0xff]   ;;  %v2726_v44 = vld [vmem:[%s3280_s4 + $0x60] sm:$0xff]  }
 0x26e   :  { %v1253_v59 = vpack.c.bf16 %v1245_v40, %v1245_v40  ;;  %v1255_v60 = vpack.c.bf16 %v1247_v61, %v1247_v61 }
 0x26f   :  { %v1254_v57 = vpack.c.bf16 %v1246_v35, %v1246_v35  ;;  %v1256_v58 = vpack.c.bf16 %v1248_v56, %v1248_v56 }
 0x271   :  { %1886 = vmatprep.mubr.bf16.mxu0 %v1254_v57  ;;  %1926 = vmatprep.mubr.bf16.mxu1 %v1256_v58 }
 0x272   :  { %1887 = vmatmul.mubr.bf16.vlgmr.msra.gmra.mrb[12].mxu0 %v1253_v59  ;;  %1927 = vmatmul.mubr.bf16.vlgmr.msra.gmra.mrb[12].mxu1 %v1255_v60  ;;  %v2730_v59 = vld [vmem:[%s3280_s4 + $0x80] sm:$0xff]   ;;  %v2731_v60 = vld [vmem:[%s3280_s4 + $0x88] sm:$0xff]  }
 0x273   :  { %2551 = vmatpush3.bf16.msra.mxu0 %v2714_v7  ;;  %2566 = vmatprep.mubr.msk.bf16.mxu0 %vm2803_vm0, %v2802_v8 }
 0x274   :  { %2552 = vmatprep.subr.bf16.mxu0 %v2802_v8  ;;  %2586 = vmatprep.mubr.msk.bf16.mxu1 %vm2803_vm0, %v2802_v8 }
 0x275   :  { %2571 = vmatpush3.bf16.msra.mxu1 %v2722_v47 }
 0x276   :  { %2572 = vmatprep.subr.bf16.mxu1 %v2802_v8 }
 0x277   :  { %2553 = vmatpush3.bf16.msra.mxu0 %v2715_v9 }
 0x278   :  { %2554 = vmatprep.subr.bf16.mxu0 %v2802_v8 }
 0x279   :  { %2573 = vmatpush3.bf16.msra.mxu1 %v2723_v42 }
 0x27a   :  { %2574 = vmatprep.subr.bf16.mxu1 %v2802_v8 }
 0x27b   :  { %2555 = vmatpush3.bf16.msra.mxu0 %v2716_v10 }
 0x27c   :  { %2556 = vmatprep.subr.bf16.mxu0 %v2802_v8 }
 0x27d   :  { %2575 = vmatpush3.bf16.msra.mxu1 %v2724_v43 }
 0x27e   :  { %2576 = vmatprep.subr.bf16.mxu1 %v2802_v8 }
 0x27f   :  { %2557 = vmatpush3.bf16.msra.mxu0 %v2717_v12 }
 0x280   :  { %2558 = vmatprep.subr.bf16.mxu0 %v2802_v8 }
 0x281   :  { %2577 = vmatpush3.bf16.msra.mxu1 %v2725_v31 }
 0x282   :  { %2578 = vmatprep.subr.bf16.mxu1 %v2802_v8 }
 0x283   :  { %2559 = vmatpush3.bf16.msra.mxu0 %v2718_v13 }
 0x284   :  { %2560 = vmatprep.subr.bf16.mxu0 %v2802_v8 }
 0x285   :  { %2579 = vmatpush3.bf16.msra.mxu1 %v2726_v44 }
 0x286   :  { %2580 = vmatprep.subr.bf16.mxu1 %v2802_v8 }
 0x287   :  { %2561 = vmatpush3.bf16.msra.mxu0 %v2719_v14  ;;  %v2426_v14 = vld [vmem:[%s3281_s5 + $0x3] ss:$0 sm:$0xff] }
 0x288   :  { %2562 = vmatprep.subr.bf16.mxu0 %v2802_v8 }
 0x289   :  { %v2451_v18 = vpop.f32.mrb[8].mxu0  ;;  %v2473_v62 = vpop.f32.mrb[8].mxu1  ;;  %2581 = vmatpush3.bf16.msra.mxu1 %v2727_v45 }
 0x28a   :  { %v2452_v41 = vpop.f32.mrb[9].mxu0  ;;  %v2474_v0 = vpop.f32.mrb[9].mxu1  ;;  %2582 = vmatprep.subr.bf16.mxu1 %v2802_v8 }
 0x28b   :  { %v2453_v1 = vadd.f32 %v2452_v41, %v2451_v18  ;;  %v2475_v11 = vadd.f32 %v2474_v0, %v2473_v62  ;;  %v2454_v2 = vpop.f32.mrb[10].mxu0  ;;  %v2476_v3 = vpop.f32.mrb[10].mxu1  ;;  %2563 = vmatpush3.bf16.msra.mxu0 %v2720_v15  ;;  %v2732_v18 = vld [vmem:[%s3280_s4 + $0x90] sm:$0xff]   ;;  %v2733_v62 = vld [vmem:[%s3280_s4 + $0x98] sm:$0xff]   ;;  %v2735_v41 = vld [vmem:[%s3280_s4 + $0xa8] sm:$0xff]  }
 0x28c   :  { %v2455_v4 = vpop.f32.mrb[11].mxu0  ;;  %v2477_v55 = vpop.f32.mrb[11].mxu1  ;;  %2564 = vmatprep.subr.bf16.mxu0 %v2802_v8  ;;  %v2736_v0 = vld [vmem:[%s3280_s4 + $0xb0] sm:$0xff]  }
 0x28d   :  { %v1809_v5 = vadd.f32 %v2453_v1, %v2308_v63  ;;  %2583 = vmatpush3.bf16.msra.mxu1 %v2728_v26  ;;  %v2734_v63 = vld [vmem:[%s3280_s4 + $0xa0] sm:$0xff]   ;;  %v2737_v1 = vld [vmem:[%s3280_s4 + $0xb8] sm:$0xff]  }
 0x28e   :  { %2584 = vmatprep.subr.bf16.mxu1 %v2802_v8 }
 0x28f   :  { %v1849_v6 = vadd.f32 %v2475_v11, %v1809_v5  ;;  %2565 = vmatpush3.bf16.msra.mxu0 %v2721_v16  ;;  %v2400_v11 = vld [vmem:[%s3281_s5 + $0x2] ss:$0 sm:$0xff] }
 0x290   :  { %2590 = vmatprep.subr.bf16.mxu0 %v2802_v8 }
 0x291   :  { %2585 = vmatpush3.bf16.msra.mxu1 %v2729_v46 }
 0x345   :  { %v2495_v17 = vpop.f32.mrb[12].mxu0  ;;  %v2517_v19 = vpop.f32.mrb[12].mxu1 }
 0x346   :  { %v2496_v22 = vpop.f32.mrb[13].mxu0  ;;  %v2518_v20 = vpop.f32.mrb[13].mxu1 }
 0x347   :  { %v2497_v21 = vadd.f32 %v2496_v22, %v2495_v17  ;;  %v2519_v23 = vadd.f32 %v2518_v20, %v2517_v19  ;;  %v2498_v24 = vpop.f32.mrb[14].mxu0  ;;  %v2520_v25 = vpop.f32.mrb[14].mxu1 }
 0x348   :  { %v2499_v27 = vpop.f32.mrb[15].mxu0  ;;  %v2521_v28 = vpop.f32.mrb[15].mxu1 }
 0x349   :  { %v1889_v29 = vadd.f32 %v2497_v21, %v1849_v6 }
 0x34b   :  { %v1929_v30 = vadd.f32 %v2519_v23, %v1889_v29 }
 0x34d   :  { %v2373_v32 = vmul.f32 -1.702, %v1929_v30 }
 0x34f   :  { %v1936_v33 = vmul.f32 1.442695, %v2373_v32 }
 0x351   :  { %2738 = vpow2.f32 %v1936_v33 }
 0x35b   :  { %v2739_v34 = vpop.eup %2738 }
 0x35c   :  { %v1938_v37 = vadd.f32 1.0, %v2739_v34 }
 0x35e   :  { %2740 = vrcp.f32 %v1938_v37 }
 0x368   :  { %v2741_v38 = vpop.eup %2740 }
 0x369   :  { %v1941_v51 = vmul.f32 %v2741_v38, %v1929_v30 }
 0x36b   :  { %v1942_v39 = vpack.c.bf16 %v1941_v51, %v1941_v51 }
 0x36d   :  { %2567 = vmatmul.mubr.bf16.vlgmr.msra.gmra.mrb[16].mxu0 %v1942_v39 }
 0x36e   :  { %2606 = vmatprep.mubr.msk.bf16.mxu0 %vm2803_vm0, %v2802_v8  ;;  %2591 = vmatpush3.bf16.msra.mxu0 %v2730_v59 }
 0x36f   :  { %2592 = vmatprep.subr.bf16.mxu0 %v2802_v8 }
 0x372   :  { %2593 = vmatpush3.bf16.msra.mxu0 %v2731_v60 }
 0x373   :  { %2594 = vmatprep.subr.bf16.mxu0 %v2802_v8 }
 0x376   :  { %2595 = vmatpush3.bf16.msra.mxu0 %v2732_v18 }
 0x377   :  { %2596 = vmatprep.subr.bf16.mxu0 %v2802_v8 }
 0x37a   :  { %2597 = vmatpush3.bf16.msra.mxu0 %v2733_v62 }
 0x37b   :  { %2598 = vmatprep.subr.bf16.mxu0 %v2802_v8 }
 0x37e   :  { %2599 = vmatpush3.bf16.msra.mxu0 %v2734_v63 }
 0x37f   :  { %2600 = vmatprep.subr.bf16.mxu0 %v2802_v8 }
 0x382   :  { %2601 = vmatpush3.bf16.msra.mxu0 %v2735_v41 }
 0x383   :  { %2602 = vmatprep.subr.bf16.mxu0 %v2802_v8 }
 0x386   :  { %2603 = vmatpush3.bf16.msra.mxu0 %v2736_v0 }
 0x387   :  { %2604 = vmatprep.subr.bf16.mxu0 %v2802_v8 }
 0x38a   :  { %2605 = vmatpush3.bf16.msra.mxu0 %v2737_v1 }
 0x440   :  { %v2046_v49 = vpop.f32.mrb[16].mxu0 }
 0x441   :  { %v2047_v36 = vadd.f32 %v2374_v48, %v2046_v49  ;;  %v2568_v50 = vpop.f32.mrb[17].mxu0 }
 0x442   :  { %v2049_v52 = vpop.f32.mrb[18].mxu0 }
 0x443   :  { %v2383_v40 = vmul.f32 -1.702, %v2047_v36  ;;  %v2569_v61 = vpop.f32.mrb[19].mxu0 }
 0x445   :  { %v2054_v53 = vmul.f32 1.442695, %v2383_v40 }
 0x447   :  { %2742 = vpow2.f32 %v2054_v53 }
 0x451   :  { %v2743_v54 = vpop.eup %2742 }
 0x452   :  { %v2056_v35 = vadd.f32 1.0, %v2743_v54 }
 0x454   :  { %2744 = vrcp.f32 %v2056_v35 }
 0x45e   :  { %v2745_v56 = vpop.eup %2744 }
 0x45f   :  { %v2059_v57 = vmul.f32 %v2745_v56, %v2047_v36 }
 0x461   :  { %v2060_v58 = vpack.c.bf16 %v2059_v57, %v2059_v57 }
 0x463   :  { %2587 = vmatmul.mubr.bf16.vlgmr.msra.gmra.mrb[16].mxu1 %v2060_v58 }
 0x536   :  { %v2165_v2 = vpop.f32.mrb[16].mxu1 }
 0x537   :  { %v2166_v3 = vadd.f32 %v2400_v11, %v2165_v2  ;;  %v2588_v4 = vpop.f32.mrb[17].mxu1 }
 0x538   :  { %v2168_v55 = vpop.f32.mrb[18].mxu1 }
 0x539   :  { %v2409_v5 = vmul.f32 -1.702, %v2166_v3  ;;  %v2589_v6 = vpop.f32.mrb[19].mxu1 }
 0x53b   :  { %v2173_v7 = vmul.f32 1.442695, %v2409_v5 }
 0x53d   :  { %2746 = vpow2.f32 %v2173_v7 }
 0x547   :  { %v2747_v9 = vpop.eup %2746 }
 0x548   :  { %v2175_v10 = vadd.f32 1.0, %v2747_v9 }
 0x54a   :  { %2748 = vrcp.f32 %v2175_v10 }
 0x554   :  { %v2749_v8 = vpop.eup %2748 }
 0x555   :  { %v2178_v12 = vmul.f32 %v2749_v8, %v2166_v3 }
 0x557   :  { %v2179_v13 = vpack.c.bf16 %v2178_v12, %v2178_v12 }
 0x559   :  { %2607 = vmatmul.mubr.bf16.vlgmr.msra.gmra.mrb[20].mxu0 %v2179_v13 }
 0x62c   :  { %v2284_v15 = vpop.f32.mrb[20].mxu0 }
 0x62d   :  { %v2285_v16 = vadd.f32 %v2426_v14, %v2284_v15  ;;  %v2608_v17 = vpop.f32.mrb[21].mxu0 }
 0x62e   :  { %v2287_v19 = vpop.f32.mrb[22].mxu0 }
 0x62f   :  { %2290 = vst [vmem:[#allocation5] sm:$0x3] %v2285_v16  ;;  %v2609_v22 = vpop.f32.mrb[23].mxu0 }
 0x630   :  { %2783 = shalt.err (!%p2780_p12)
}
 0x631   :  { %s2784_s5 = scalar_lea.hbm %s3282_s6, 32 }
 0x632   :  { %p2785_p13 = scmp.ne.s32.totalorder %s3282_s6, %s2784_s5  ;;  %p2788_p0 = scmp.lt.u32.totalorder %s2784_s5, %s3282_s6 }
 0x634   :  { %p2790_p1 = pnand %p2788_p0, %p2785_p13 }
 0x636   :  { %2793 = shalt.err (!%p2790_p1)
}
 0x637   :  { %2300 = dma.vmem_to_hbm [thread:$0]  %s2298_s3, 32, %s3282_s6, [#allocation4]  }
 0x638   :  { %2796 = dma.done.wait [#allocation4], 32  }
 0x639   :  { %2797 = vsyncadd [#allocation4], 4294967264 }
 0x63a   :  { %2304 = vsyncpa [#allocation3], 1 }
 0x63b   :  { %2305 = vsyncpa [#allocation4], 1 }

</bundles_post_ra>
